<compile_context>
chip_gen: v5e
topology: v5e:2x2
jax: 0.10.0
libtpu: 0.0.40
codegen_flags: <defaults>
</compile_context>

<pallas_src>
import jax
import jax.numpy as jnp
from jax.experimental import pallas as pl
from jax.experimental.pallas import tpu as pltpu


def _round_up(x: int, m: int) -> int:
    return (x + m - 1) // m * m


def _layout(output_dim: int, emb_dim: int, hid_dim: int):
    """Padded feature dim, fc_out vocab tile and padded vocab size."""
    d = max(_round_up(emb_dim, 128), _round_up(hid_dim, 128))
    tile_v = min(2048, _round_up(output_dim, 128))
    v_pad = _round_up(output_dim, tile_v)     # pad vocab UP to the tile
    return d, tile_v, v_pad


# ----------------------------- Pallas kernels -------------------------------


def _lstm_step_kernel(tok_ref, emb_hbm, h_in_ref, c_in_ref, w_ref, b_ref,
                      h_out_ref, c_out_ref, top_h_ref,
                      x_ref, dma_sems):
    """One LSTM timestep over all layers (runs once, grid=(1,)).

    Shapes (padded):
      tok:   (B,) int32 in SMEM          emb:  (V_rows, D) f32 in HBM (pl.ANY)
      h/c:   (L, B, D) f32 in VMEM       w:    (L, 2D, 4D) bf16    b: (L, 1, 4D) f32
      out:   h/c (L, B, D) f32, top_h (B, D) f32
      x_ref: (B, D) f32 VMEM scratch for the gathered embedding rows
    """
    L, B, D = h_in_ref.shape

    # ---- embedding row-gather: B tiny DMAs issued together, then waited ----
    for b in range(B):
        pltpu.make_async_copy(
            emb_hbm.at[pl.ds(tok_ref[b], 1), :],
            x_ref.at[pl.ds(b, 1), :],
            dma_sems.at[b]).start()
    for b in range(B):
        pltpu.make_async_copy(
            emb_hbm.at[pl.ds(tok_ref[b], 1), :],
            x_ref.at[pl.ds(b, 1), :],
            dma_sems.at[b]).wait()

    # ---- LSTM stack, one timestep, all state resident in VMEM ----
    layer_in = x_ref[...].astype(jnp.bfloat16)        # (B, D) bf16
    h_new = None
    for l in range(L):                                # static unroll (L small)
        h = h_in_ref[l]                               # (B, D) f32
        c = c_in_ref[l]
        # gates = [x, h] @ [W_ih; W_hh] + b, as two dots on static ref slices
        # of the fused weight (no (B, 2D) concat temporary).
        gates = (jnp.dot(layer_in, w_ref[l, 0:D, :],
                         preferred_element_type=jnp.float32)
                 + jnp.dot(h.astype(jnp.bfloat16), w_ref[l, D:2 * D, :],
                           preferred_element_type=jnp.float32)
                 + b_ref[l])
        # lane-aligned gate blocks (each a multiple of 128 lanes),
        # PyTorch gate order [i, f, g, o]
        i_g = jax.nn.sigmoid(gates[:, 0 * D:1 * D])
        f_g = jax.nn.sigmoid(gates[:, 1 * D:2 * D])
        g_g = jnp.tanh(gates[:, 2 * D:3 * D])
        o_g = jax.nn.sigmoid(gates[:, 3 * D:4 * D])
        c_new = f_g * c + i_g * g_g
        h_new = o_g * jnp.tanh(c_new)
        h_out_ref[l] = h_new
        c_out_ref[l] = c_new
        layer_in = h_new.astype(jnp.bfloat16)

    top_h_ref[...] = h_new      # top-layer hidden == LSTM "output" this step


def _fc_out_kernel(top_h_ref, fcw_ref, fcb_ref, pred_ref):
    """One lane-dense vocab tile of fc_out (vocab axis is 'parallel')."""
    pred_ref[...] = (jnp.dot(top_h_ref[...].astype(jnp.bfloat16), fcw_ref[...],
                             preferred_element_type=jnp.float32)
                     + fcb_ref[...])


# ------------------------------ parameter setup -----------------------------


def _build_fused_lstm_weights(w_ih, w_hh, b_ih, b_hh, d_pad):
    """PyTorch (4H, in) weights -> fused, padded, pre-transposed (2*d_pad, 4*d_pad)."""
    four_h = w_ih.shape[0]
    H = four_h // 4

    def pad_gates(w):                                   # (4H, in) -> (d_pad, 4*d_pad)
        in_dim = w.shape[-1]
        w = w.reshape(4, H, in_dim)
        w = jnp.pad(w, ((0, 0), (0, d_pad - H), (0, d_pad - in_dim)))
        return jnp.transpose(w, (2, 0, 1)).reshape(d_pad, 4 * d_pad)

    w = jnp.concatenate([pad_gates(w_ih), pad_gates(w_hh)], axis=0)   # (2D, 4D)

    b = (b_ih + b_hh).reshape(4, H)
    b = jnp.pad(b, ((0, 0), (0, d_pad - H))).reshape(1, 4 * d_pad)
    return w.astype(jnp.bfloat16), b.astype(jnp.float32)


def init_decoder_params(key, output_dim, emb_dim, hid_dim, n_layers):
    """Returns (padded kernel params, raw PyTorch-layout params for the reference)."""
    D, _, v_pad = _layout(output_dim, emb_dim, hid_dim)
    v_rows = _round_up(output_dim, 8)         # embedding rows (HBM only)

    keys = jax.random.split(key, 2 + 4 * n_layers + 2)
    ki = iter(keys)
    scale = 0.1

    emb = scale * jax.random.normal(next(ki), (output_dim, emb_dim), jnp.float32)
    emb_pad = jnp.zeros((v_rows, D), jnp.float32).at[:output_dim, :emb_dim].set(emb)

    raw = {"embedding": emb, "lstm": []}
    w_list, b_list = [], []
    for l in range(n_layers):
        in_dim = emb_dim if l == 0 else hid_dim
        w_ih = scale * jax.random.normal(next(ki), (4 * hid_dim, in_dim), jnp.float32)
        w_hh = scale * jax.random.normal(next(ki), (4 * hid_dim, hid_dim), jnp.float32)
        b_ih = scale * jax.random.normal(next(ki), (4 * hid_dim,), jnp.float32)
        b_hh = scale * jax.random.normal(next(ki), (4 * hid_dim,), jnp.float32)
        raw["lstm"].append({"w_ih": w_ih, "w_hh": w_hh, "b_ih": b_ih, "b_hh": b_hh})
        w, b = _build_fused_lstm_weights(w_ih, w_hh, b_ih, b_hh, D)
        w_list.append(w)
        b_list.append(b)

    fc_w = scale * jax.random.normal(next(ki), (output_dim, hid_dim), jnp.float32)
    fc_b = scale * jax.random.normal(next(ki), (output_dim,), jnp.float32)
    raw["fc_w"] = fc_w
    raw["fc_b"] = fc_b
    fc_w_pad = jnp.zeros((D, v_pad), jnp.float32).at[:hid_dim, :output_dim].set(fc_w.T)
    fc_b_pad = jnp.zeros((1, v_pad), jnp.float32).at[0, :output_dim].set(fc_b)

    params = {
        "embedding": emb_pad,                         # (V_rows, D)  f32 (HBM only)
        "w_lstm": jnp.stack(w_list, 0),               # (L, 2D, 4D)  bf16
        "b_lstm": jnp.stack(b_list, 0),               # (L, 1, 4D)   f32
        "fc_w": fc_w_pad.astype(jnp.bfloat16),        # (D, V_pad)   bf16
        "fc_b": fc_b_pad,                             # (1, V_pad)   f32
    }
    return params, raw


def pad_decoder_state(hidden, cell, output_dim, emb_dim, hid_dim):
    """Pad (L, B, H) f32 state to the kernel-resident (L, B_pad, D) layout once."""
    D, _, _ = _layout(output_dim, emb_dim, hid_dim)
    L, B, H = hidden.shape
    b_pad = _round_up(max(B, 8), 8)
    h = jnp.zeros((L, b_pad, D), jnp.float32).at[:, :B, :H].set(hidden)
    c = jnp.zeros((L, b_pad, D), jnp.float32).at[:, :B, :H].set(cell)
    return h, c


# ------------------------------ forward wrapper ------------------------------


def make_decoder_step(output_dim, emb_dim, hid_dim, n_layers):
    D, tile_v, v_pad = _layout(output_dim, emb_dim, hid_dim)
    n_v_tiles = v_pad // tile_v
    F32, BF16 = 4, 2

    def step(params, token_ids, h_pad, c_pad):
        L, B_pad, _ = h_pad.shape
        n_tok = token_ids.shape[0]
        tok = jnp.zeros((B_pad,), jnp.int32).at[:n_tok].set(token_ids.astype(jnp.int32))

        # -------- call 1: embedding row-gather + LSTM stack (serial) --------
        lstm_blocks = (
            4 * (L * B_pad * D * F32) * 2          # h, c in + out (double-buffered)
            + (L * 2 * D * 4 * D * BF16) * 2       # fused LSTM weights
            + (L * 4 * D * F32) * 2                # fused bias
            + (B_pad * D * F32) * 2                # top_h output
            + B_pad * D * F32                      # gather scratch
        )
        lstm_vmem = min(max(lstm_blocks + (2 << 20), 16 << 20), 64 << 20)

        h_new, c_new, top_h = pl.pallas_call(
            _lstm_step_kernel,
            grid_spec=pltpu.PrefetchScalarGridSpec(
                num_scalar_prefetch=0,
                grid=(1,),
                in_specs=[
                    pl.BlockSpec(memory_space=pltpu.MemorySpace.SMEM),     # token ids
                    pl.BlockSpec(memory_space=pl.ANY),                     # emb table (HBM)
                    pl.BlockSpec((L, B_pad, D), lambda i: (0, 0, 0)),      # hidden
                    pl.BlockSpec((L, B_pad, D), lambda i: (0, 0, 0)),      # cell
                    pl.BlockSpec((L, 2 * D, 4 * D), lambda i: (0, 0, 0)),  # fused W
                    pl.BlockSpec((L, 1, 4 * D), lambda i: (0, 0, 0)),      # fused b
                ],
                out_specs=[
                    pl.BlockSpec((L, B_pad, D), lambda i: (0, 0, 0)),      # new hidden
                    pl.BlockSpec((L, B_pad, D), lambda i: (0, 0, 0)),      # new cell
                    pl.BlockSpec((B_pad, D), lambda i: (0, 0)),            # top-layer h
                ],
                scratch_shapes=[
                    pltpu.VMEM((B_pad, D), jnp.float32),                   # gathered emb
                    pltpu.SemaphoreType.DMA((B_pad,)),
                ],
            ),
            out_shape=(
                jax.ShapeDtypeStruct((L, B_pad, D), jnp.float32),
                jax.ShapeDtypeStruct((L, B_pad, D), jnp.float32),
                jax.ShapeDtypeStruct((B_pad, D), jnp.float32),
            ),
            # hidden/cell updated in place (paired with donate_argnums below)
            input_output_aliases={2: 0, 3: 1},
            compiler_params=pltpu.CompilerParams(
                dimension_semantics=("arbitrary",),
                vmem_limit_bytes=lstm_vmem,
            ),
        )(tok, params["embedding"], h_pad, c_pad,
          params["w_lstm"], params["b_lstm"])

        # -------- call 2: fc_out vocab projection, 'parallel' vocab tiles --------
        if n_v_tiles >= 3:   # 3-deep weight-stream prefetch when it can help
            fcw_spec = pl.BlockSpec((D, tile_v), lambda j: (0, j),
                                    pipeline_mode=pl.Buffered(3))
            n_fcw_bufs = 3
        else:
            fcw_spec = pl.BlockSpec((D, tile_v), lambda j: (0, j))
            n_fcw_bufs = 2

        fc_blocks = (
            (B_pad * D * F32) * 2                  # top_h (resident)
            + (D * tile_v * BF16) * n_fcw_bufs     # fc_w tiles
            + (tile_v * F32) * 2                   # fc_b tiles
            + (B_pad * tile_v * F32) * 2           # prediction tiles
        )
        fc_vmem = min(max(fc_blocks + (2 << 20), 16 << 20), 64 << 20)

        pred_pad = pl.pallas_call(
            _fc_out_kernel,
            grid_spec=pltpu.PrefetchScalarGridSpec(
                num_scalar_prefetch=0,
                grid=(n_v_tiles,),
                in_specs=[
                    pl.BlockSpec((B_pad, D), lambda j: (0, 0)),            # top h
                    fcw_spec,                                              # fc_w tile
                    pl.BlockSpec((1, tile_v), lambda j: (0, j)),           # fc_b tile
                ],
                out_specs=pl.BlockSpec((B_pad, tile_v), lambda j: (0, j)),
            ),
            out_shape=jax.ShapeDtypeStruct((B_pad, v_pad), jnp.float32),
            compiler_params=pltpu.CompilerParams(
                # 'parallel' lets v7x shard the vocab tiles across both TCs;
                # harmless (single core) on v5e / v6e.
                dimension_semantics=("parallel",),
                vmem_limit_bytes=fc_vmem,
            ),
        )(top_h, params["fc_w"], params["fc_b"])

        return pred_pad, h_new, c_new

    # donate the padded h/c so the pallas input_output_aliases reuse their HBM
    # buffers in place across decode steps.
    return jax.jit(step, donate_argnums=(2, 3))


# ------------------------------ pure-JAX reference ---------------------------


def reference_forward(raw, token_ids, hidden, cell):
    H = hidden.shape[-1]
    x = raw["embedding"][token_ids]
    new_h, new_c = [], []
    layer_in = x
    for l, p in enumerate(raw["lstm"]):
        gates = (layer_in @ p["w_ih"].T + hidden[l] @ p["w_hh"].T
                 + p["b_ih"] + p["b_hh"])
        i = jax.nn.sigmoid(gates[:, 0 * H:1 * H])
        f = jax.nn.sigmoid(gates[:, 1 * H:2 * H])
        g = jnp.tanh(gates[:, 2 * H:3 * H])
        o = jax.nn.sigmoid(gates[:, 3 * H:4 * H])
        c = f * cell[l] + i * g
        h = o * jnp.tanh(c)
        new_h.append(h)
        new_c.append(c)
        layer_in = h
    pred = layer_in @ raw["fc_w"].T + raw["fc_b"]
    return pred, jnp.stack(new_h, 0), jnp.stack(new_c, 0)


# --------------------------------- main ---------------------------------------

if __name__ == "__main__":
    OUTPUT_DIM = 32   # vocab size
    EMB_DIM = 16
    HID_DIM = 32
    N_LAYERS = 2
    BATCH = 2

    root = jax.random.PRNGKey(0)
    k_params, k_tok, k_h, k_c = jax.random.split(root, 4)

    params, raw = init_decoder_params(k_params, OUTPUT_DIM, EMB_DIM, HID_DIM, N_LAYERS)
    step = make_decoder_step(OUTPUT_DIM, EMB_DIM, HID_DIM, N_LAYERS)

    token_ids = jax.random.randint(k_tok, (BATCH,), 0, OUTPUT_DIM, jnp.int32)
    hidden = 0.1 * jax.random.normal(k_h, (N_LAYERS, BATCH, HID_DIM), jnp.float32)
    cell = 0.1 * jax.random.normal(k_c, (N_LAYERS, BATCH, HID_DIM), jnp.float32)

    # pad state once; the padded layout is what gets carried across decode steps
    h_pad, c_pad = pad_decoder_state(hidden, cell, OUTPUT_DIM, EMB_DIM, HID_DIM)

    pred_pad, h_pad_new, c_pad_new = step(params, token_ids, h_pad, c_pad)
    jax.block_until_ready((pred_pad, h_pad_new, c_pad_new))

    # slice back to the PyTorch-visible shapes only at the boundary
    prediction = pred_pad[:BATCH, :OUTPUT_DIM]
    new_hidden = h_pad_new[:, :BATCH, :HID_DIM]
    new_cell = c_pad_new[:, :BATCH, :HID_DIM]

    assert prediction.shape == (BATCH, OUTPUT_DIM)
    assert new_hidden.shape == (N_LAYERS, BATCH, HID_DIM)
    assert new_cell.shape == (N_LAYERS, BATCH, HID_DIM)

    # correctness vs. pure-JAX f32 reference (bf16 matmul operands -> loose tol)
    p_ref, h_ref, c_ref = reference_forward(raw, token_ids, hidden, cell)
    assert float(jnp.max(jnp.abs(prediction - p_ref))) < 5e-2
    assert float(jnp.max(jnp.abs(new_hidden - h_ref))) < 5e-2
    assert float(jnp.max(jnp.abs(new_cell - c_ref))) < 5e-2

    print("KERNEL_OK")
</pallas_src>

<mosaic_0001>
module attributes {stable_mosaic.version = 11 : i64} {
  func.func @_fc_out_kernel(%arg0: i32, %arg1: memref<8x128xf32, #tpu.memory_space<vmem>>, %arg2: memref<128x128xbf16, #tpu.memory_space<vmem>>, %arg3: memref<1x128xf32, #tpu.memory_space<vmem>>, %arg4: memref<8x128xf32, #tpu.memory_space<vmem>>) attributes {dimension_semantics = [#tpu.dimension_semantics<parallel>], iteration_bounds = array<i64: 1>, scalar_prefetch = 0 : i64, scratch_operands = 0 : i64, tpu.core_type = #tpu.core_type<tc>, window_params = [{pipeline_mode = #tpu.pipeline_mode<synchronous>, transform_indices = @transform_0, window_bounds = array<i64: 8, 128>}, {transform_indices = @transform_1, window_bounds = array<i64: 128, 128>}, {transform_indices = @transform_2, window_bounds = array<i64: 1, 128>}, {transform_indices = @transform_3, window_bounds = array<i64: 8, 128>}]} {
    %c0 = arith.constant 0 : index
    %c0_0 = arith.constant 0 : index
    %0 = vector.load %arg1[%c0, %c0_0] : memref<8x128xf32, #tpu.memory_space<vmem>>, vector<8x128xf32>
    %1 = arith.truncf %0 : vector<8x128xf32> to vector<8x128xbf16>
    %c0_1 = arith.constant 0 : index
    %c0_2 = arith.constant 0 : index
    %2 = vector.load %arg2[%c0_1, %c0_2] : memref<128x128xbf16, #tpu.memory_space<vmem>>, vector<128x128xbf16>
    %cst = arith.constant dense<0.000000e+00> : vector<8x128xf32>
    %3 = tpu.matmul %1, %2, %cst {dimension_numbers = #tpu.dot_dimension_numbers<[1], [0], [0], [1], [0, 0, 1, 1], [], []>} : vector<8x128xbf16>, vector<128x128xbf16>, vector<8x128xf32> -> vector<8x128xf32>
    %c0_3 = arith.constant 0 : index
    %c0_4 = arith.constant 0 : index
    %4 = vector.load %arg3[%c0_3, %c0_4] : memref<1x128xf32, #tpu.memory_space<vmem>>, vector<1x128xf32>
    %5 = vector.broadcast %4 : vector<1x128xf32> to vector<8x128xf32>
    %6 = arith.addf %3, %5 : vector<8x128xf32>
    %c0_5 = arith.constant 0 : index
    %c0_6 = arith.constant 0 : index
    %7 = vector.load %arg4[%c0_5, %c0_6] : memref<8x128xf32, #tpu.memory_space<vmem>>, vector<8x128xf32>
    tpu.vector_store %arg4[%c0_5, %c0_6], %6 {strides = array<i32>} : memref<8x128xf32, #tpu.memory_space<vmem>>, vector<8x128xf32>,
    return
  }
  func.func @transform_0(%arg0: i32) -> (i32, i32) {
    %c0_i32 = arith.constant 0 : i32
    %c0_i32_0 = arith.constant 0 : i32
    %c0_i32_1 = arith.constant 0 : i32
    return %c0_i32, %c0_i32_0 : i32, i32
  }
  func.func @transform_1(%arg0: i32) -> (i32, i32) {
    %c0_i32 = arith.constant 0 : i32
    %c0_i32_0 = arith.constant 0 : i32
    return %c0_i32, %arg0 : i32, i32
  }
  func.func @transform_2(%arg0: i32) -> (i32, i32) {
    %c0_i32 = arith.constant 0 : i32
    %c0_i32_0 = arith.constant 0 : i32
    return %c0_i32, %arg0 : i32, i32
  }
  func.func @transform_3(%arg0: i32) -> (i32, i32) {
    %c0_i32 = arith.constant 0 : i32
    %c0_i32_0 = arith.constant 0 : i32
    return %c0_i32, %arg0 : i32, i32
  }
}

module attributes {stable_mosaic.version = 11 : i64} {
  func.func @_lstm_step_kernel(%arg0: i32, %arg1: memref<8xi32, #tpu.memory_space<smem>>, %arg2: memref<32x128xf32, #tpu.memory_space<any>>, %arg3: memref<2x8x128xf32, #tpu.memory_space<vmem>>, %arg4: memref<2x8x128xf32, #tpu.memory_space<vmem>>, %arg5: memref<2x256x512xbf16, #tpu.memory_space<vmem>>, %arg6: memref<2x1x512xf32, #tpu.memory_space<vmem>>, %arg7: memref<2x8x128xf32, #tpu.memory_space<vmem>>, %arg8: memref<2x8x128xf32, #tpu.memory_space<vmem>>, %arg9: memref<8x128xf32, #tpu.memory_space<vmem>>, %arg10: memref<8x128xf32, #tpu.memory_space<vmem>>, %arg11: memref<8x!tpu.dma_semaphore, #tpu.memory_space<semaphore_mem>>) attributes {dimension_semantics = [#tpu.dimension_semantics<arbitrary>], iteration_bounds = array<i64: 1>, scalar_prefetch = 0 : i64, scratch_operands = 2 : i64, tpu.core_type = #tpu.core_type<tc>, window_params = [{transform_indices = @transform_0, window_bounds = array<i64: 8>}, {}, {pipeline_mode = #tpu.pipeline_mode<synchronous>, transform_indices = @transform_2, window_bounds = array<i64: 2, 8, 128>}, {pipeline_mode = #tpu.pipeline_mode<synchronous>, transform_indices = @transform_3, window_bounds = array<i64: 2, 8, 128>}, {pipeline_mode = #tpu.pipeline_mode<synchronous>, transform_indices = @transform_4, window_bounds = array<i64: 2, 256, 512>}, {pipeline_mode = #tpu.pipeline_mode<synchronous>, transform_indices = @transform_5, window_bounds = array<i64: 2, 1, 512>}, {pipeline_mode = #tpu.pipeline_mode<synchronous>, transform_indices = @transform_6, window_bounds = array<i64: 2, 8, 128>}, {pipeline_mode = #tpu.pipeline_mode<synchronous>, transform_indices = @transform_7, window_bounds = array<i64: 2, 8, 128>}, {pipeline_mode = #tpu.pipeline_mode<synchronous>, transform_indices = @transform_8, window_bounds = array<i64: 8, 128>}]} {
    %c0 = arith.constant 0 : index
    %0 = memref.load %arg1[%c0] : memref<8xi32, #tpu.memory_space<smem>>
    %c0_i32 = arith.constant 0 : i32
    %c0_i32_0 = arith.constant 0 : i32
    %1 = tpu.memref_slice %arg2[%0, %c0_i32_0] : memref<32x128xf32, #tpu.memory_space<any>> -> memref<1x128xf32, #tpu.memory_space<any>>
    %c0_i32_1 = arith.constant 0 : i32
    %c0_i32_2 = arith.constant 0 : i32
    %2 = tpu.memref_slice %arg10[%c0_i32_1, %c0_i32_2] : memref<8x128xf32, #tpu.memory_space<vmem>> -> memref<1x128xf32, #tpu.memory_space<vmem>>
    %3 = tpu.memref_slice %arg11[%c0_i32] : memref<8x!tpu.dma_semaphore, #tpu.memory_space<semaphore_mem>> -> memref<1x!tpu.dma_semaphore, #tpu.memory_space<semaphore_mem>>
    %4 = tpu.memref_squeeze %3 : memref<1x!tpu.dma_semaphore, #tpu.memory_space<semaphore_mem>> -> memref<!tpu.dma_semaphore, #tpu.memory_space<semaphore_mem>>
    tpu.enqueue_dma source(%1 : memref<1x128xf32, #tpu.memory_space<any>>) target(%2 : memref<1x128xf32, #tpu.memory_space<vmem>>) target_semaphore(%4 : memref<!tpu.dma_semaphore, #tpu.memory_space<semaphore_mem>>)
    %c1 = arith.constant 1 : index
    %5 = memref.load %arg1[%c1] : memref<8xi32, #tpu.memory_space<smem>>
    %c1_i32 = arith.constant 1 : i32
    %c0_i32_3 = arith.constant 0 : i32
    %6 = tpu.memref_slice %arg2[%5, %c0_i32_3] : memref<32x128xf32, #tpu.memory_space<any>> -> memref<1x128xf32, #tpu.memory_space<any>>
    %c1_i32_4 = arith.constant 1 : i32
    %c0_i32_5 = arith.constant 0 : i32
    %7 = tpu.memref_slice %arg10[%c1_i32_4, %c0_i32_5] : memref<8x128xf32, #tpu.memory_space<vmem>> -> memref<1x128xf32, #tpu.memory_space<vmem>>
    %8 = tpu.memref_slice %arg11[%c1_i32] : memref<8x!tpu.dma_semaphore, #tpu.memory_space<semaphore_mem>> -> memref<1x!tpu.dma_semaphore, #tpu.memory_space<semaphore_mem>>
    %9 = tpu.memref_squeeze %8 : memref<1x!tpu.dma_semaphore, #tpu.memory_space<semaphore_mem>> -> memref<!tpu.dma_semaphore, #tpu.memory_space<semaphore_mem>>
    tpu.enqueue_dma source(%6 : memref<1x128xf32, #tpu.memory_space<any>>) target(%7 : memref<1x128xf32, #tpu.memory_space<vmem>>) target_semaphore(%9 : memref<!tpu.dma_semaphore, #tpu.memory_space<semaphore_mem>>)
    %c2 = arith.constant 2 : index
    %10 = memref.load %arg1[%c2] : memref<8xi32, #tpu.memory_space<smem>>
    %c2_i32 = arith.constant 2 : i32
    %c0_i32_6 = arith.constant 0 : i32
    %11 = tpu.memref_slice %arg2[%10, %c0_i32_6] : memref<32x128xf32, #tpu.memory_space<any>> -> memref<1x128xf32, #tpu.memory_space<any>>
    %c2_i32_7 = arith.constant 2 : i32
    %c0_i32_8 = arith.constant 0 : i32
    %12 = tpu.memref_slice %arg10[%c2_i32_7, %c0_i32_8] : memref<8x128xf32, #tpu.memory_space<vmem>> -> memref<1x128xf32, #tpu.memory_space<vmem>>
    %13 = tpu.memref_slice %arg11[%c2_i32] : memref<8x!tpu.dma_semaphore, #tpu.memory_space<semaphore_mem>> -> memref<1x!tpu.dma_semaphore, #tpu.memory_space<semaphore_mem>>
    %14 = tpu.memref_squeeze %13 : memref<1x!tpu.dma_semaphore, #tpu.memory_space<semaphore_mem>> -> memref<!tpu.dma_semaphore, #tpu.memory_space<semaphore_mem>>
    tpu.enqueue_dma source(%11 : memref<1x128xf32, #tpu.memory_space<any>>) target(%12 : memref<1x128xf32, #tpu.memory_space<vmem>>) target_semaphore(%14 : memref<!tpu.dma_semaphore, #tpu.memory_space<semaphore_mem>>)
    %c3 = arith.constant 3 : index
    %15 = memref.load %arg1[%c3] : memref<8xi32, #tpu.memory_space<smem>>
    %c3_i32 = arith.constant 3 : i32
    %c0_i32_9 = arith.constant 0 : i32
    %16 = tpu.memref_slice %arg2[%15, %c0_i32_9] : memref<32x128xf32, #tpu.memory_space<any>> -> memref<1x128xf32, #tpu.memory_space<any>>
    %c3_i32_10 = arith.constant 3 : i32
    %c0_i32_11 = arith.constant 0 : i32
    %17 = tpu.memref_slice %arg10[%c3_i32_10, %c0_i32_11] : memref<8x128xf32, #tpu.memory_space<vmem>> -> memref<1x128xf32, #tpu.memory_space<vmem>>
    %18 = tpu.memref_slice %arg11[%c3_i32] : memref<8x!tpu.dma_semaphore, #tpu.memory_space<semaphore_mem>> -> memref<1x!tpu.dma_semaphore, #tpu.memory_space<semaphore_mem>>
    %19 = tpu.memref_squeeze %18 : memref<1x!tpu.dma_semaphore, #tpu.memory_space<semaphore_mem>> -> memref<!tpu.dma_semaphore, #tpu.memory_space<semaphore_mem>>
    tpu.enqueue_dma source(%16 : memref<1x128xf32, #tpu.memory_space<any>>) target(%17 : memref<1x128xf32, #tpu.memory_space<vmem>>) target_semaphore(%19 : memref<!tpu.dma_semaphore, #tpu.memory_space<semaphore_mem>>)
    %c4 = arith.constant 4 : index
    %20 = memref.load %arg1[%c4] : memref<8xi32, #tpu.memory_space<smem>>
    %c4_i32 = arith.constant 4 : i32
    %c0_i32_12 = arith.constant 0 : i32
    %21 = tpu.memref_slice %arg2[%20, %c0_i32_12] : memref<32x128xf32, #tpu.memory_space<any>> -> memref<1x128xf32, #tpu.memory_space<any>>
    %c4_i32_13 = arith.constant 4 : i32
    %c0_i32_14 = arith.constant 0 : i32
    %22 = tpu.memref_slice %arg10[%c4_i32_13, %c0_i32_14] : memref<8x128xf32, #tpu.memory_space<vmem>> -> memref<1x128xf32, #tpu.memory_space<vmem>>
    %23 = tpu.memref_slice %arg11[%c4_i32] : memref<8x!tpu.dma_semaphore, #tpu.memory_space<semaphore_mem>> -> memref<1x!tpu.dma_semaphore, #tpu.memory_space<semaphore_mem>>
    %24 = tpu.memref_squeeze %23 : memref<1x!tpu.dma_semaphore, #tpu.memory_space<semaphore_mem>> -> memref<!tpu.dma_semaphore, #tpu.memory_space<semaphore_mem>>
    tpu.enqueue_dma source(%21 : memref<1x128xf32, #tpu.memory_space<any>>) target(%22 : memref<1x128xf32, #tpu.memory_space<vmem>>) target_semaphore(%24 : memref<!tpu.dma_semaphore, #tpu.memory_space<semaphore_mem>>)
    %c5 = arith.constant 5 : index
    %25 = memref.load %arg1[%c5] : memref<8xi32, #tpu.memory_space<smem>>
    %c5_i32 = arith.constant 5 : i32
    %c0_i32_15 = arith.constant 0 : i32
    %26 = tpu.memref_slice %arg2[%25, %c0_i32_15] : memref<32x128xf32, #tpu.memory_space<any>> -> memref<1x128xf32, #tpu.memory_space<any>>
    %c5_i32_16 = arith.constant 5 : i32
    %c0_i32_17 = arith.constant 0 : i32
    %27 = tpu.memref_slice %arg10[%c5_i32_16, %c0_i32_17] : memref<8x128xf32, #tpu.memory_space<vmem>> -> memref<1x128xf32, #tpu.memory_space<vmem>>
    %28 = tpu.memref_slice %arg11[%c5_i32] : memref<8x!tpu.dma_semaphore, #tpu.memory_space<semaphore_mem>> -> memref<1x!tpu.dma_semaphore, #tpu.memory_space<semaphore_mem>>
    %29 = tpu.memref_squeeze %28 : memref<1x!tpu.dma_semaphore, #tpu.memory_space<semaphore_mem>> -> memref<!tpu.dma_semaphore, #tpu.memory_space<semaphore_mem>>
    tpu.enqueue_dma source(%26 : memref<1x128xf32, #tpu.memory_space<any>>) target(%27 : memref<1x128xf32, #tpu.memory_space<vmem>>) target_semaphore(%29 : memref<!tpu.dma_semaphore, #tpu.memory_space<semaphore_mem>>)
    %c6 = arith.constant 6 : index
    %30 = memref.load %arg1[%c6] : memref<8xi32, #tpu.memory_space<smem>>
    %c6_i32 = arith.constant 6 : i32
    %c0_i32_18 = arith.constant 0 : i32
    %31 = tpu.memref_slice %arg2[%30, %c0_i32_18] : memref<32x128xf32, #tpu.memory_space<any>> -> memref<1x128xf32, #tpu.memory_space<any>>
    %c6_i32_19 = arith.constant 6 : i32
    %c0_i32_20 = arith.constant 0 : i32
    %32 = tpu.memref_slice %arg10[%c6_i32_19, %c0_i32_20] : memref<8x128xf32, #tpu.memory_space<vmem>> -> memref<1x128xf32, #tpu.memory_space<vmem>>
    %33 = tpu.memref_slice %arg11[%c6_i32] : memref<8x!tpu.dma_semaphore, #tpu.memory_space<semaphore_mem>> -> memref<1x!tpu.dma_semaphore, #tpu.memory_space<semaphore_mem>>
    %34 = tpu.memref_squeeze %33 : memref<1x!tpu.dma_semaphore, #tpu.memory_space<semaphore_mem>> -> memref<!tpu.dma_semaphore, #tpu.memory_space<semaphore_mem>>
    tpu.enqueue_dma source(%31 : memref<1x128xf32, #tpu.memory_space<any>>) target(%32 : memref<1x128xf32, #tpu.memory_space<vmem>>) target_semaphore(%34 : memref<!tpu.dma_semaphore, #tpu.memory_space<semaphore_mem>>)
    %c7 = arith.constant 7 : index
    %35 = memref.load %arg1[%c7] : memref<8xi32, #tpu.memory_space<smem>>
    %c7_i32 = arith.constant 7 : i32
    %c0_i32_21 = arith.constant 0 : i32
    %36 = tpu.memref_slice %arg2[%35, %c0_i32_21] : memref<32x128xf32, #tpu.memory_space<any>> -> memref<1x128xf32, #tpu.memory_space<any>>
    %c7_i32_22 = arith.constant 7 : i32
    %c0_i32_23 = arith.constant 0 : i32
    %37 = tpu.memref_slice %arg10[%c7_i32_22, %c0_i32_23] : memref<8x128xf32, #tpu.memory_space<vmem>> -> memref<1x128xf32, #tpu.memory_space<vmem>>
    %38 = tpu.memref_slice %arg11[%c7_i32] : memref<8x!tpu.dma_semaphore, #tpu.memory_space<semaphore_mem>> -> memref<1x!tpu.dma_semaphore, #tpu.memory_space<semaphore_mem>>
    %39 = tpu.memref_squeeze %38 : memref<1x!tpu.dma_semaphore, #tpu.memory_space<semaphore_mem>> -> memref<!tpu.dma_semaphore, #tpu.memory_space<semaphore_mem>>
    tpu.enqueue_dma source(%36 : memref<1x128xf32, #tpu.memory_space<any>>) target(%37 : memref<1x128xf32, #tpu.memory_space<vmem>>) target_semaphore(%39 : memref<!tpu.dma_semaphore, #tpu.memory_space<semaphore_mem>>)
    %c0_24 = arith.constant 0 : index
    %40 = memref.load %arg1[%c0_24] : memref<8xi32, #tpu.memory_space<smem>>
    %c0_i32_25 = arith.constant 0 : i32
    %c0_i32_26 = arith.constant 0 : i32
    %41 = tpu.memref_slice %arg2[%40, %c0_i32_26] : memref<32x128xf32, #tpu.memory_space<any>> -> memref<1x128xf32, #tpu.memory_space<any>>
    %c0_i32_27 = arith.constant 0 : i32
    %c0_i32_28 = arith.constant 0 : i32
    %42 = tpu.memref_slice %arg10[%c0_i32_27, %c0_i32_28] : memref<8x128xf32, #tpu.memory_space<vmem>> -> memref<1x128xf32, #tpu.memory_space<vmem>>
    %43 = tpu.memref_slice %arg11[%c0_i32_25] : memref<8x!tpu.dma_semaphore, #tpu.memory_space<semaphore_mem>> -> memref<1x!tpu.dma_semaphore, #tpu.memory_space<semaphore_mem>>
    %44 = tpu.memref_squeeze %43 : memref<1x!tpu.dma_semaphore, #tpu.memory_space<semaphore_mem>> -> memref<!tpu.dma_semaphore, #tpu.memory_space<semaphore_mem>>
    tpu.wait_dma2 semaphore(%44 : memref<!tpu.dma_semaphore, #tpu.memory_space<semaphore_mem>>) src(%41 : memref<1x128xf32, #tpu.memory_space<any>>) dst(%42 : memref<1x128xf32, #tpu.memory_space<vmem>>)
    %c1_29 = arith.constant 1 : index
    %45 = memref.load %arg1[%c1_29] : memref<8xi32, #tpu.memory_space<smem>>
    %c1_i32_30 = arith.constant 1 : i32
    %c0_i32_31 = arith.constant 0 : i32
    %46 = tpu.memref_slice %arg2[%45, %c0_i32_31] : memref<32x128xf32, #tpu.memory_space<any>> -> memref<1x128xf32, #tpu.memory_space<any>>
    %c1_i32_32 = arith.constant 1 : i32
    %c0_i32_33 = arith.constant 0 : i32
    %47 = tpu.memref_slice %arg10[%c1_i32_32, %c0_i32_33] : memref<8x128xf32, #tpu.memory_space<vmem>> -> memref<1x128xf32, #tpu.memory_space<vmem>>
    %48 = tpu.memref_slice %arg11[%c1_i32_30] : memref<8x!tpu.dma_semaphore, #tpu.memory_space<semaphore_mem>> -> memref<1x!tpu.dma_semaphore, #tpu.memory_space<semaphore_mem>>
    %49 = tpu.memref_squeeze %48 : memref<1x!tpu.dma_semaphore, #tpu.memory_space<semaphore_mem>> -> memref<!tpu.dma_semaphore, #tpu.memory_space<semaphore_mem>>
    tpu.wait_dma2 semaphore(%49 : memref<!tpu.dma_semaphore, #tpu.memory_space<semaphore_mem>>) src(%46 : memref<1x128xf32, #tpu.memory_space<any>>) dst(%47 : memref<1x128xf32, #tpu.memory_space<vmem>>)
    %c2_34 = arith.constant 2 : index
    %50 = memref.load %arg1[%c2_34] : memref<8xi32, #tpu.memory_space<smem>>
    %c2_i32_35 = arith.constant 2 : i32
    %c0_i32_36 = arith.constant 0 : i32
    %51 = tpu.memref_slice %arg2[%50, %c0_i32_36] : memref<32x128xf32, #tpu.memory_space<any>> -> memref<1x128xf32, #tpu.memory_space<any>>
    %c2_i32_37 = arith.constant 2 : i32
    %c0_i32_38 = arith.constant 0 : i32
    %52 = tpu.memref_slice %arg10[%c2_i32_37, %c0_i32_38] : memref<8x128xf32, #tpu.memory_space<vmem>> -> memref<1x128xf32, #tpu.memory_space<vmem>>
    %53 = tpu.memref_slice %arg11[%c2_i32_35] : memref<8x!tpu.dma_semaphore, #tpu.memory_space<semaphore_mem>> -> memref<1x!tpu.dma_semaphore, #tpu.memory_space<semaphore_mem>>
    %54 = tpu.memref_squeeze %53 : memref<1x!tpu.dma_semaphore, #tpu.memory_space<semaphore_mem>> -> memref<!tpu.dma_semaphore, #tpu.memory_space<semaphore_mem>>
    tpu.wait_dma2 semaphore(%54 : memref<!tpu.dma_semaphore, #tpu.memory_space<semaphore_mem>>) src(%51 : memref<1x128xf32, #tpu.memory_space<any>>) dst(%52 : memref<1x128xf32, #tpu.memory_space<vmem>>)
    %c3_39 = arith.constant 3 : index
    %55 = memref.load %arg1[%c3_39] : memref<8xi32, #tpu.memory_space<smem>>
    %c3_i32_40 = arith.constant 3 : i32
    %c0_i32_41 = arith.constant 0 : i32
    %56 = tpu.memref_slice %arg2[%55, %c0_i32_41] : memref<32x128xf32, #tpu.memory_space<any>> -> memref<1x128xf32, #tpu.memory_space<any>>
    %c3_i32_42 = arith.constant 3 : i32
    %c0_i32_43 = arith.constant 0 : i32
    %57 = tpu.memref_slice %arg10[%c3_i32_42, %c0_i32_43] : memref<8x128xf32, #tpu.memory_space<vmem>> -> memref<1x128xf32, #tpu.memory_space<vmem>>
    %58 = tpu.memref_slice %arg11[%c3_i32_40] : memref<8x!tpu.dma_semaphore, #tpu.memory_space<semaphore_mem>> -> memref<1x!tpu.dma_semaphore, #tpu.memory_space<semaphore_mem>>
    %59 = tpu.memref_squeeze %58 : memref<1x!tpu.dma_semaphore, #tpu.memory_space<semaphore_mem>> -> memref<!tpu.dma_semaphore, #tpu.memory_space<semaphore_mem>>
    tpu.wait_dma2 semaphore(%59 : memref<!tpu.dma_semaphore, #tpu.memory_space<semaphore_mem>>) src(%56 : memref<1x128xf32, #tpu.memory_space<any>>) dst(%57 : memref<1x128xf32, #tpu.memory_space<vmem>>)
    %c4_44 = arith.constant 4 : index
    %60 = memref.load %arg1[%c4_44] : memref<8xi32, #tpu.memory_space<smem>>
    %c4_i32_45 = arith.constant 4 : i32
    %c0_i32_46 = arith.constant 0 : i32
    %61 = tpu.memref_slice %arg2[%60, %c0_i32_46] : memref<32x128xf32, #tpu.memory_space<any>> -> memref<1x128xf32, #tpu.memory_space<any>>
    %c4_i32_47 = arith.constant 4 : i32
    %c0_i32_48 = arith.constant 0 : i32
    %62 = tpu.memref_slice %arg10[%c4_i32_47, %c0_i32_48] : memref<8x128xf32, #tpu.memory_space<vmem>> -> memref<1x128xf32, #tpu.memory_space<vmem>>
    %63 = tpu.memref_slice %arg11[%c4_i32_45] : memref<8x!tpu.dma_semaphore, #tpu.memory_space<semaphore_mem>> -> memref<1x!tpu.dma_semaphore, #tpu.memory_space<semaphore_mem>>
    %64 = tpu.memref_squeeze %63 : memref<1x!tpu.dma_semaphore, #tpu.memory_space<semaphore_mem>> -> memref<!tpu.dma_semaphore, #tpu.memory_space<semaphore_mem>>
    tpu.wait_dma2 semaphore(%64 : memref<!tpu.dma_semaphore, #tpu.memory_space<semaphore_mem>>) src(%61 : memref<1x128xf32, #tpu.memory_space<any>>) dst(%62 : memref<1x128xf32, #tpu.memory_space<vmem>>)
    %c5_49 = arith.constant 5 : index
    %65 = memref.load %arg1[%c5_49] : memref<8xi32, #tpu.memory_space<smem>>
    %c5_i32_50 = arith.constant 5 : i32
    %c0_i32_51 = arith.constant 0 : i32
    %66 = tpu.memref_slice %arg2[%65, %c0_i32_51] : memref<32x128xf32, #tpu.memory_space<any>> -> memref<1x128xf32, #tpu.memory_space<any>>
    %c5_i32_52 = arith.constant 5 : i32
    %c0_i32_53 = arith.constant 0 : i32
    %67 = tpu.memref_slice %arg10[%c5_i32_52, %c0_i32_53] : memref<8x128xf32, #tpu.memory_space<vmem>> -> memref<1x128xf32, #tpu.memory_space<vmem>>
    %68 = tpu.memref_slice %arg11[%c5_i32_50] : memref<8x!tpu.dma_semaphore, #tpu.memory_space<semaphore_mem>> -> memref<1x!tpu.dma_semaphore, #tpu.memory_space<semaphore_mem>>
    %69 = tpu.memref_squeeze %68 : memref<1x!tpu.dma_semaphore, #tpu.memory_space<semaphore_mem>> -> memref<!tpu.dma_semaphore, #tpu.memory_space<semaphore_mem>>
    tpu.wait_dma2 semaphore(%69 : memref<!tpu.dma_semaphore, #tpu.memory_space<semaphore_mem>>) src(%66 : memref<1x128xf32, #tpu.memory_space<any>>) dst(%67 : memref<1x128xf32, #tpu.memory_space<vmem>>)
    %c6_54 = arith.constant 6 : index
    %70 = memref.load %arg1[%c6_54] : memref<8xi32, #tpu.memory_space<smem>>
    %c6_i32_55 = arith.constant 6 : i32
    %c0_i32_56 = arith.constant 0 : i32
    %71 = tpu.memref_slice %arg2[%70, %c0_i32_56] : memref<32x128xf32, #tpu.memory_space<any>> -> memref<1x128xf32, #tpu.memory_space<any>>
    %c6_i32_57 = arith.constant 6 : i32
    %c0_i32_58 = arith.constant 0 : i32
    %72 = tpu.memref_slice %arg10[%c6_i32_57, %c0_i32_58] : memref<8x128xf32, #tpu.memory_space<vmem>> -> memref<1x128xf32, #tpu.memory_space<vmem>>
    %73 = tpu.memref_slice %arg11[%c6_i32_55] : memref<8x!tpu.dma_semaphore, #tpu.memory_space<semaphore_mem>> -> memref<1x!tpu.dma_semaphore, #tpu.memory_space<semaphore_mem>>
    %74 = tpu.memref_squeeze %73 : memref<1x!tpu.dma_semaphore, #tpu.memory_space<semaphore_mem>> -> memref<!tpu.dma_semaphore, #tpu.memory_space<semaphore_mem>>
    tpu.wait_dma2 semaphore(%74 : memref<!tpu.dma_semaphore, #tpu.memory_space<semaphore_mem>>) src(%71 : memref<1x128xf32, #tpu.memory_space<any>>) dst(%72 : memref<1x128xf32, #tpu.memory_space<vmem>>)
    %c7_59 = arith.constant 7 : index
    %75 = memref.load %arg1[%c7_59] : memref<8xi32, #tpu.memory_space<smem>>
    %c7_i32_60 = arith.constant 7 : i32
    %c0_i32_61 = arith.constant 0 : i32
    %76 = tpu.memref_slice %arg2[%75, %c0_i32_61] : memref<32x128xf32, #tpu.memory_space<any>> -> memref<1x128xf32, #tpu.memory_space<any>>
    %c7_i32_62 = arith.constant 7 : i32
    %c0_i32_63 = arith.constant 0 : i32
    %77 = tpu.memref_slice %arg10[%c7_i32_62, %c0_i32_63] : memref<8x128xf32, #tpu.memory_space<vmem>> -> memref<1x128xf32, #tpu.memory_space<vmem>>
    %78 = tpu.memref_slice %arg11[%c7_i32_60] : memref<8x!tpu.dma_semaphore, #tpu.memory_space<semaphore_mem>> -> memref<1x!tpu.dma_semaphore, #tpu.memory_space<semaphore_mem>>
    %79 = tpu.memref_squeeze %78 : memref<1x!tpu.dma_semaphore, #tpu.memory_space<semaphore_mem>> -> memref<!tpu.dma_semaphore, #tpu.memory_space<semaphore_mem>>
    tpu.wait_dma2 semaphore(%79 : memref<!tpu.dma_semaphore, #tpu.memory_space<semaphore_mem>>) src(%76 : memref<1x128xf32, #tpu.memory_space<any>>) dst(%77 : memref<1x128xf32, #tpu.memory_space<vmem>>)
    %c0_64 = arith.constant 0 : index
    %c0_65 = arith.constant 0 : index
    %80 = vector.load %arg10[%c0_64, %c0_65] : memref<8x128xf32, #tpu.memory_space<vmem>>, vector<8x128xf32>
    %81 = arith.truncf %80 : vector<8x128xf32> to vector<8x128xbf16>
    %c0_66 = arith.constant 0 : index
    %c0_67 = arith.constant 0 : index
    %c0_68 = arith.constant 0 : index
    %82 = vector.load %arg3[%c0_66, %c0_67, %c0_68] : memref<2x8x128xf32, #tpu.memory_space<vmem>>, vector<1x8x128xf32>
    %83 = vector.shape_cast %82 : vector<1x8x128xf32> to vector<8x128xf32>
    %c0_69 = arith.constant 0 : index
    %c0_70 = arith.constant 0 : index
    %c0_71 = arith.constant 0 : index
    %84 = vector.load %arg4[%c0_69, %c0_70, %c0_71] : memref<2x8x128xf32, #tpu.memory_space<vmem>>, vector<1x8x128xf32>
    %85 = vector.shape_cast %84 : vector<1x8x128xf32> to vector<8x128xf32>
    %c0_72 = arith.constant 0 : index
    %c0_73 = arith.constant 0 : index
    %c0_74 = arith.constant 0 : index
    %86 = vector.load %arg5[%c0_72, %c0_73, %c0_74] : memref<2x256x512xbf16, #tpu.memory_space<vmem>>, vector<1x128x512xbf16>
    %87 = vector.shape_cast %86 : vector<1x128x512xbf16> to vector<128x512xbf16>
    %cst = arith.constant dense<0.000000e+00> : vector<8x512xf32>
    %88 = tpu.matmul %81, %87, %cst {dimension_numbers = #tpu.dot_dimension_numbers<[1], [0], [0], [1], [0, 0, 1, 1], [], []>} : vector<8x128xbf16>, vector<128x512xbf16>, vector<8x512xf32> -> vector<8x512xf32>
    %89 = arith.truncf %83 : vector<8x128xf32> to vector<8x128xbf16>
    %c0_75 = arith.constant 0 : index
    %c128 = arith.constant 128 : index
    %c0_76 = arith.constant 0 : index
    %90 = vector.load %arg5[%c0_75, %c128, %c0_76] : memref<2x256x512xbf16, #tpu.memory_space<vmem>>, vector<1x128x512xbf16>
    %91 = vector.shape_cast %90 : vector<1x128x512xbf16> to vector<128x512xbf16>
    %cst_77 = arith.constant dense<0.000000e+00> : vector<8x512xf32>
    %92 = tpu.matmul %89, %91, %cst_77 {dimension_numbers = #tpu.dot_dimension_numbers<[1], [0], [0], [1], [0, 0, 1, 1], [], []>} : vector<8x128xbf16>, vector<128x512xbf16>, vector<8x512xf32> -> vector<8x512xf32>
    %93 = arith.addf %88, %92 : vector<8x512xf32>
    %c0_78 = arith.constant 0 : index
    %c0_79 = arith.constant 0 : index
    %c0_80 = arith.constant 0 : index
    %94 = vector.load %arg6[%c0_78, %c0_79, %c0_80] : memref<2x1x512xf32, #tpu.memory_space<vmem>>, vector<1x1x512xf32>
    %95 = vector.shape_cast %94 : vector<1x1x512xf32> to vector<1x512xf32>
    %96 = vector.broadcast %95 : vector<1x512xf32> to vector<8x512xf32>
    %97 = arith.addf %93, %96 : vector<8x512xf32>
    %98 = vector.extract_strided_slice %97 {offsets = [0, 0], sizes = [8, 128], strides = [1, 1]} : vector<8x512xf32> to vector<8x128xf32>
    %99 = arith.negf %98 : vector<8x128xf32>
    %100 = math.exp %99 : vector<8x128xf32>
    %cst_81 = arith.constant 1.000000e+00 : f32
    %101 = vector.broadcast %cst_81 : f32 to vector<8x128xf32>
    %102 = arith.addf %101, %100 : vector<8x128xf32>
    %103 = arith.divf %101, %102 : vector<8x128xf32>
    %104 = vector.extract_strided_slice %97 {offsets = [0, 128], sizes = [8, 128], strides = [1, 1]} : vector<8x512xf32> to vector<8x128xf32>
    %105 = arith.negf %104 : vector<8x128xf32>
    %106 = math.exp %105 : vector<8x128xf32>
    %cst_82 = arith.constant 1.000000e+00 : f32
    %107 = vector.broadcast %cst_82 : f32 to vector<8x128xf32>
    %108 = arith.addf %107, %106 : vector<8x128xf32>
    %109 = arith.divf %107, %108 : vector<8x128xf32>
    %110 = vector.extract_strided_slice %97 {offsets = [0, 256], sizes = [8, 128], strides = [1, 1]} : vector<8x512xf32> to vector<8x128xf32>
    %111 = math.tanh %110 : vector<8x128xf32>
    %112 = vector.extract_strided_slice %97 {offsets = [0, 384], sizes = [8, 128], strides = [1, 1]} : vector<8x512xf32> to vector<8x128xf32>
    %113 = arith.negf %112 : vector<8x128xf32>
    %114 = math.exp %113 : vector<8x128xf32>
    %cst_83 = arith.constant 1.000000e+00 : f32
    %115 = vector.broadcast %cst_83 : f32 to vector<8x128xf32>
    %116 = arith.addf %115, %114 : vector<8x128xf32>
    %117 = arith.divf %115, %116 : vector<8x128xf32>
    %118 = arith.mulf %109, %85 : vector<8x128xf32>
    %119 = arith.mulf %103, %111 : vector<8x128xf32>
    %120 = arith.addf %118, %119 : vector<8x128xf32>
    %121 = math.tanh %120 : vector<8x128xf32>
    %122 = arith.mulf %117, %121 : vector<8x128xf32>
    %c0_84 = arith.constant 0 : index
    %c0_85 = arith.constant 0 : index
    %c0_86 = arith.constant 0 : index
    %123 = vector.load %arg7[%c0_84, %c0_85, %c0_86] : memref<2x8x128xf32, #tpu.memory_space<vmem>>, vector<1x8x128xf32>
    %124 = vector.shape_cast %123 : vector<1x8x128xf32> to vector<8x128xf32>
    %125 = vector.shape_cast %122 : vector<8x128xf32> to vector<1x8x128xf32>
    tpu.vector_store %arg7[%c0_84, %c0_85, %c0_86], %125 {strides = array<i32>} : memref<2x8x128xf32, #tpu.memory_space<vmem>>, vector<1x8x128xf32>,
    %c0_87 = arith.constant 0 : index
    %c0_88 = arith.constant 0 : index
    %c0_89 = arith.constant 0 : index
    %126 = vector.load %arg8[%c0_87, %c0_88, %c0_89] : memref<2x8x128xf32, #tpu.memory_space<vmem>>, vector<1x8x128xf32>
    %127 = vector.shape_cast %126 : vector<1x8x128xf32> to vector<8x128xf32>
    %128 = vector.shape_cast %120 : vector<8x128xf32> to vector<1x8x128xf32>
    tpu.vector_store %arg8[%c0_87, %c0_88, %c0_89], %128 {strides = array<i32>} : memref<2x8x128xf32, #tpu.memory_space<vmem>>, vector<1x8x128xf32>,
    %129 = arith.truncf %122 : vector<8x128xf32> to vector<8x128xbf16>
    %c1_90 = arith.constant 1 : index
    %c0_91 = arith.constant 0 : index
    %c0_92 = arith.constant 0 : index
    %130 = vector.load %arg3[%c1_90, %c0_91, %c0_92] : memref<2x8x128xf32, #tpu.memory_space<vmem>>, vector<1x8x128xf32>
    %131 = vector.shape_cast %130 : vector<1x8x128xf32> to vector<8x128xf32>
    %c1_93 = arith.constant 1 : index
    %c0_94 = arith.constant 0 : index
    %c0_95 = arith.constant 0 : index
    %132 = vector.load %arg4[%c1_93, %c0_94, %c0_95] : memref<2x8x128xf32, #tpu.memory_space<vmem>>, vector<1x8x128xf32>
    %133 = vector.shape_cast %132 : vector<1x8x128xf32> to vector<8x128xf32>
    %c1_96 = arith.constant 1 : index
    %c0_97 = arith.constant 0 : index
    %c0_98 = arith.constant 0 : index
    %134 = vector.load %arg5[%c1_96, %c0_97, %c0_98] : memref<2x256x512xbf16, #tpu.memory_space<vmem>>, vector<1x128x512xbf16>
    %135 = vector.shape_cast %134 : vector<1x128x512xbf16> to vector<128x512xbf16>
    %cst_99 = arith.constant dense<0.000000e+00> : vector<8x512xf32>
    %136 = tpu.matmul %129, %135, %cst_99 {dimension_numbers = #tpu.dot_dimension_numbers<[1], [0], [0], [1], [0, 0, 1, 1], [], []>} : vector<8x128xbf16>, vector<128x512xbf16>, vector<8x512xf32> -> vector<8x512xf32>
    %137 = arith.truncf %131 : vector<8x128xf32> to vector<8x128xbf16>
    %c1_100 = arith.constant 1 : index
    %c128_101 = arith.constant 128 : index
    %c0_102 = arith.constant 0 : index
    %138 = vector.load %arg5[%c1_100, %c128_101, %c0_102] : memref<2x256x512xbf16, #tpu.memory_space<vmem>>, vector<1x128x512xbf16>
    %139 = vector.shape_cast %138 : vector<1x128x512xbf16> to vector<128x512xbf16>
    %cst_103 = arith.constant dense<0.000000e+00> : vector<8x512xf32>
    %140 = tpu.matmul %137, %139, %cst_103 {dimension_numbers = #tpu.dot_dimension_numbers<[1], [0], [0], [1], [0, 0, 1, 1], [], []>} : vector<8x128xbf16>, vector<128x512xbf16>, vector<8x512xf32> -> vector<8x512xf32>
    %141 = arith.addf %136, %140 : vector<8x512xf32>
    %c1_104 = arith.constant 1 : index
    %c0_105 = arith.constant 0 : index
    %c0_106 = arith.constant 0 : index
    %142 = vector.load %arg6[%c1_104, %c0_105, %c0_106] : memref<2x1x512xf32, #tpu.memory_space<vmem>>, vector<1x1x512xf32>
    %143 = vector.shape_cast %142 : vector<1x1x512xf32> to vector<1x512xf32>
    %144 = vector.broadcast %143 : vector<1x512xf32> to vector<8x512xf32>
    %145 = arith.addf %141, %144 : vector<8x512xf32>
    %146 = vector.extract_strided_slice %145 {offsets = [0, 0], sizes = [8, 128], strides = [1, 1]} : vector<8x512xf32> to vector<8x128xf32>
    %147 = arith.negf %146 : vector<8x128xf32>
    %148 = math.exp %147 : vector<8x128xf32>
    %cst_107 = arith.constant 1.000000e+00 : f32
    %149 = vector.broadcast %cst_107 : f32 to vector<8x128xf32>
    %150 = arith.addf %149, %148 : vector<8x128xf32>
    %151 = arith.divf %149, %150 : vector<8x128xf32>
    %152 = vector.extract_strided_slice %145 {offsets = [0, 128], sizes = [8, 128], strides = [1, 1]} : vector<8x512xf32> to vector<8x128xf32>
    %153 = arith.negf %152 : vector<8x128xf32>
    %154 = math.exp %153 : vector<8x128xf32>
    %cst_108 = arith.constant 1.000000e+00 : f32
    %155 = vector.broadcast %cst_108 : f32 to vector<8x128xf32>
    %156 = arith.addf %155, %154 : vector<8x128xf32>
    %157 = arith.divf %155, %156 : vector<8x128xf32>
    %158 = vector.extract_strided_slice %145 {offsets = [0, 256], sizes = [8, 128], strides = [1, 1]} : vector<8x512xf32> to vector<8x128xf32>
    %159 = math.tanh %158 : vector<8x128xf32>
    %160 = vector.extract_strided_slice %145 {offsets = [0, 384], sizes = [8, 128], strides = [1, 1]} : vector<8x512xf32> to vector<8x128xf32>
    %161 = arith.negf %160 : vector<8x128xf32>
    %162 = math.exp %161 : vector<8x128xf32>
    %cst_109 = arith.constant 1.000000e+00 : f32
    %163 = vector.broadcast %cst_109 : f32 to vector<8x128xf32>
    %164 = arith.addf %163, %162 : vector<8x128xf32>
    %165 = arith.divf %163, %164 : vector<8x128xf32>
    %166 = arith.mulf %157, %133 : vector<8x128xf32>
    %167 = arith.mulf %151, %159 : vector<8x128xf32>
    %168 = arith.addf %166, %167 : vector<8x128xf32>
    %169 = math.tanh %168 : vector<8x128xf32>
    %170 = arith.mulf %165, %169 : vector<8x128xf32>
    %c1_110 = arith.constant 1 : index
    %c0_111 = arith.constant 0 : index
    %c0_112 = arith.constant 0 : index
    %171 = vector.load %arg7[%c1_110, %c0_111, %c0_112] : memref<2x8x128xf32, #tpu.memory_space<vmem>>, vector<1x8x128xf32>
    %172 = vector.shape_cast %171 : vector<1x8x128xf32> to vector<8x128xf32>
    %173 = vector.shape_cast %170 : vector<8x128xf32> to vector<1x8x128xf32>
    tpu.vector_store %arg7[%c1_110, %c0_111, %c0_112], %173 {strides = array<i32>} : memref<2x8x128xf32, #tpu.memory_space<vmem>>, vector<1x8x128xf32>,
    %c1_113 = arith.constant 1 : index
    %c0_114 = arith.constant 0 : index
    %c0_115 = arith.constant 0 : index
    %174 = vector.load %arg8[%c1_113, %c0_114, %c0_115] : memref<2x8x128xf32, #tpu.memory_space<vmem>>, vector<1x8x128xf32>
    %175 = vector.shape_cast %174 : vector<1x8x128xf32> to vector<8x128xf32>
    %176 = vector.shape_cast %168 : vector<8x128xf32> to vector<1x8x128xf32>
    tpu.vector_store %arg8[%c1_113, %c0_114, %c0_115], %176 {strides = array<i32>} : memref<2x8x128xf32, #tpu.memory_space<vmem>>, vector<1x8x128xf32>,
    %c0_116 = arith.constant 0 : index
    %c0_117 = arith.constant 0 : index
    %177 = vector.load %arg9[%c0_116, %c0_117] : memref<8x128xf32, #tpu.memory_space<vmem>>, vector<8x128xf32>
    tpu.vector_store %arg9[%c0_116, %c0_117], %170 {strides = array<i32>} : memref<8x128xf32, #tpu.memory_space<vmem>>, vector<8x128xf32>,
    return
  }
  func.func @transform_0(%arg0: i32) -> i32 {
    %c0_i32 = arith.constant 0 : i32
    %c0_i32_0 = arith.constant 0 : i32
    return %c0_i32 : i32
  }
  func.func @transform_2(%arg0: i32) -> (i32, i32, i32) {
    %c0_i32 = arith.constant 0 : i32
    %c0_i32_0 = arith.constant 0 : i32
    %c0_i32_1 = arith.constant 0 : i32
    %c0_i32_2 = arith.constant 0 : i32
    return %c0_i32, %c0_i32_0, %c0_i32_1 : i32, i32, i32
  }
  func.func @transform_3(%arg0: i32) -> (i32, i32, i32) {
    %c0_i32 = arith.constant 0 : i32
    %c0_i32_0 = arith.constant 0 : i32
    %c0_i32_1 = arith.constant 0 : i32
    %c0_i32_2 = arith.constant 0 : i32
    return %c0_i32, %c0_i32_0, %c0_i32_1 : i32, i32, i32
  }
  func.func @transform_4(%arg0: i32) -> (i32, i32, i32) {
    %c0_i32 = arith.constant 0 : i32
    %c0_i32_0 = arith.constant 0 : i32
    %c0_i32_1 = arith.constant 0 : i32
    %c0_i32_2 = arith.constant 0 : i32
    return %c0_i32, %c0_i32_0, %c0_i32_1 : i32, i32, i32
  }
  func.func @transform_5(%arg0: i32) -> (i32, i32, i32) {
    %c0_i32 = arith.constant 0 : i32
    %c0_i32_0 = arith.constant 0 : i32
    %c0_i32_1 = arith.constant 0 : i32
    %c0_i32_2 = arith.constant 0 : i32
    return %c0_i32, %c0_i32_0, %c0_i32_1 : i32, i32, i32
  }
  func.func @transform_6(%arg0: i32) -> (i32, i32, i32) {
    %c0_i32 = arith.constant 0 : i32
    %c0_i32_0 = arith.constant 0 : i32
    %c0_i32_1 = arith.constant 0 : i32
    %c0_i32_2 = arith.constant 0 : i32
    return %c0_i32, %c0_i32_0, %c0_i32_1 : i32, i32, i32
  }
  func.func @transform_7(%arg0: i32) -> (i32, i32, i32) {
    %c0_i32 = arith.constant 0 : i32
    %c0_i32_0 = arith.constant 0 : i32
    %c0_i32_1 = arith.constant 0 : i32
    %c0_i32_2 = arith.constant 0 : i32
    return %c0_i32, %c0_i32_0, %c0_i32_1 : i32, i32, i32
  }
  func.func @transform_8(%arg0: i32) -> (i32, i32) {
    %c0_i32 = arith.constant 0 : i32
    %c0_i32_0 = arith.constant 0 : i32
    %c0_i32_1 = arith.constant 0 : i32
    return %c0_i32, %c0_i32_0 : i32, i32
  }
}

</mosaic_0001>

<bundles_post_ra>
// kernel: step.3
= control target key start
LH: loop header
LB: loop body
LE: loop exit
PB: predicated region body
PF: predicated region fallthrough
CT: control target
= control target key end

     0   :  { %8 = vsyncpa [#allocation3], 0  ;;  %s265_s0 = inlined_call_operand.vmem [shape: f32[8,128], index: 0, kind: input, shape index: {}]   ;;  %s266_s1 = inlined_call_operand.hbm [shape: bf16[128,128], index: 1, kind: input, shape index: {}]   ;;  %s267_s2 = inlined_call_operand.vmem [shape: f32[1,128], index: 2, kind: input, shape index: {}]   ;;  %s268_s3 = inlined_call_operand.hbm [shape: f32[8,128], index: 3, kind: output, shape index: {}]  }
   0x1   :  { %9 = vsyncpa [#allocation4], 0  ;;  %s16_s14 = sshll.u32 %s266_s1, 4  ;;  %s229_s15 = smov [#allocation2]   ;;  %s17_s14 = int_to_ptr.hbm [resolvable:$true] %s16_s14 }
   0x2   :  { %s18_s16 = sshll.u32 %s229_s15, 4  ;;  %s230_s17 = smov 64   ;;  %s19_s16 = int_to_ptr.vmem [resolvable:$true] %s18_s16 }
   0x3   :  { %s231_s18 = smov 4  }
   0x4   :  { %24 = dma.hbm_to_vmem [thread:$0]  %s17_s14, 1024, %s19_s16, [#allocation3], %s230_s17, %s230_s17, %s231_s18  }
   0x5   :  { %225 = dma.done.wait [#allocation3], 1024  }
   0x6   :  { %226 = vsyncadd [#allocation3], 4294966272  ;;  %v171_v0 = vld [vmem:[#allocation2 + $0x38] sm:$0xff]  ;;  %v170_v1 = vld [vmem:[#allocation2 + $0x30] sm:$0xff]  ;;  %s232_s22 = smov [#allocation5]   ;;  %s122_s26 = sshll.u32 %s268_s3, 4  ;;  %s123_s26 = int_to_ptr.hbm [resolvable:$true] %s122_s26 }
   0x7   :  { %101 = vmatpush.bf16.msra.mxu0 %v171_v0  ;;  %v169_v2 = vld [vmem:[#allocation2 + $0x28] sm:$0xff]  ;;  %v168_v3 = vld [vmem:[#allocation2 + $0x20] sm:$0xff]  ;;  %v167_v4 = vld [vmem:[#allocation2 + $0x18] sm:$0xff]  ;;  %s120_s23 = sshll.u32 %s232_s22, 4  ;;  %s121_s23 = int_to_ptr.vmem [resolvable:$true] %s120_s23 }
   0x8   :  { %v166_v5 = vld [vmem:[#allocation2 + $0x10] sm:$0xff]  ;;  %v165_v6 = vld [vmem:[#allocation2 + $0x8] sm:$0xff]  ;;  %v164_v7 = vld [vmem:[#allocation2] sm:$0xff] }
   0x9   :  { %v31_v8 = vld [vmem:[%s265_s0] sm:$0xff] }
   0xa   :  { %v32_v9 = vpack.c.bf16 %v31_v8, %v31_v8  ;;  %v176_v10 = vld [vmem:[%s267_s2] ss:$0 sm:$0xff] }
   0xb   :  { %102 = vmatpush.bf16.msra.mxu0 %v170_v1 }
   0xf   :  { %103 = vmatpush.bf16.msra.mxu0 %v169_v2 }
  0x13   :  { %104 = vmatpush.bf16.msra.mxu0 %v168_v3 }
  0x17   :  { %105 = vmatpush.bf16.msra.mxu0 %v167_v4 }
  0x1b   :  { %106 = vmatpush.bf16.msra.mxu0 %v166_v5 }
  0x1f   :  { %107 = vmatpush.bf16.msra.mxu0 %v165_v6 }
  0x23   :  { %108 = vmatpush.bf16.msra.mxu0 %v164_v7 }
  0x26   :  { %109 = vmatmul.bf16.vlgmr.msra.gmra.mxu0 %v32_v9 }
  0xa3   :  { %v110_v11 = vpop.f32.mrf.mxu0 }
  0xa4   :  { %v111_v12 = vadd.f32 %v176_v10, %v110_v11 }
  0xa6   :  { %114 = vst [vmem:[#allocation5] sm:$0xff] %v111_v12 }
  0xa7   :  { %125 = dma.vmem_to_hbm [thread:$0]  %s121_s23, 128, %s123_s26, [#allocation4]  }
  0xab   :  { %v112_v13 = vpop.f32.mrf.mxu0 }
  0xac   :  { %227 = dma.done.wait [#allocation4], 128  }
  0xad   :  { %228 = vsyncadd [#allocation4], 4294967168 }
  0xae   :  { %130 = vsyncpa [#allocation3], 1 }
  0xaf   :  { %131 = vsyncpa [#allocation4], 1 }

// kernel: step.2
= control target key start
LH: loop header
LB: loop body
LE: loop exit
PB: predicated region body
PF: predicated region fallthrough
CT: control target
= control target key end

     0   :  { %14 = vsyncpa [#allocation7], 0  ;;  %s2813_s0 = inlined_call_operand.vmem [shape: s32[8], index: 0, kind: input, shape index: {}]   ;;  %s2814_s1 = inlined_call_operand.hbm [shape: f32[32,128], index: 1, kind: input, shape index: {}]   ;;  %s2815_s2 = inlined_call_operand.hbm [shape: f32[2,8,128], index: 2, kind: input, shape index: {}, may-alias: {2,6}]   ;;  %s2816_s3 = inlined_call_operand.hbm [shape: f32[2,8,128], index: 3, kind: input, shape index: {}, may-alias: {3,7}]   ;;  %s2817_s4 = inlined_call_operand.hbm [shape: bf16[2,256,512], index: 4, kind: input, shape index: {}]   ;;  %s2818_s5 = inlined_call_operand.hbm [shape: f32[2,1,512], index: 5, kind: input, shape index: {}]   ;;  %s2819_s6 = inlined_call_operand.hbm [shape: f32[2,8,128], index: 6, kind: output, shape index: {0}, may-alias: {2,6}]   ;;  %s2820_s7 = inlined_call_operand.hbm [shape: f32[2,8,128], index: 7, kind: output, shape index: {1}, may-alias: {3,7}]   ;;  %s2821_s8 = inlined_call_operand.vmem [shape: f32[8,128], index: 8, kind: output, shape index: {2}]  }
   0x1   :  { %15 = vsyncpa [#allocation5], 0 }
   0x2   :  { %16 = vsyncpa [#allocation10], 0 }
   0x3   :  { %17 = vsyncpa [#allocation13], 0 }
   0x4   :  { %18 = vsyncpa [#allocation6], 0 }
   0x5   :  { %19 = vsyncpa [#allocation16], 0  ;;  %s46_s29 = sshll.u32 %s2816_s3, 4  ;;  %s2608_s30 = smov [#allocation9]   ;;  %s47_s29 = int_to_ptr.hbm [resolvable:$true] %s46_s29 }
   0x6   :  { %s48_s9 = sshll.u32 %s2608_s30, 4  ;;  %s25_s12 = sshll.u32 %s2813_s0, 4  ;;  %s49_s9 = int_to_ptr.vmem [resolvable:$true] %s48_s9  ;;  %s26_s12 = int_to_ptr.vmem [resolvable:$true] %s25_s12 }
   0x7   :  { %s2609_s13 = smov 128   ;;  %s2610_s14 = smov 8  }
   0x8   :  { %54 = dma.hbm_to_vmem [thread:$0]  %s47_s29, 256, %s49_s9, [#allocation10], %s2609_s13, %s2609_s13, %s2610_s14  }
   0x9   :  { %s2611_s15 = smov [#allocation4]   ;;  %s33_s3 = sshll.u32 %s2815_s2, 4  ;;  %s34_s3 = int_to_ptr.hbm [resolvable:$true] %s33_s3 }
   0xa   :  { %28 = dma.vmem_to_smem %s26_s12, 16, %s2611_s15, [#allocation7]  }
   0xb   :  { %s2612_s18 = smov [#allocation8]   ;;  %s59_s0 = sshll.u32 %s2817_s4, 4  ;;  %s60_s0 = int_to_ptr.hbm [resolvable:$true] %s59_s0 }
   0xc   :  { %s35_s19 = sshll.u32 %s2612_s18, 4  ;;  %s2613_s22 = smov [#allocation11]   ;;  %s36_s19 = int_to_ptr.vmem [resolvable:$true] %s35_s19 }
   0xd   :  { %41 = dma.hbm_to_vmem [thread:$0]  %s34_s3, 256, %s36_s19, [#allocation5], %s2609_s13, %s2609_s13, %s2610_s14  }
   0xe   :  { %s61_s23 = sshll.u32 %s2613_s22, 4  ;;  %s2614_s24 = smov 256   ;;  %s62_s23 = int_to_ptr.vmem [resolvable:$true] %s61_s23 }
   0xf   :  { %s2615_s25 = smov 16   ;;  %s72_s27 = sshll.u32 %s2818_s5, 4  ;;  %s73_s27 = int_to_ptr.hbm [resolvable:$true] %s72_s27 }
  0x10   :  { %67 = dma.hbm_to_vmem [thread:$0]  %s60_s0, 16384, %s62_s23, [#allocation10], %s2614_s24, %s2614_s24, %s2615_s25  }
  0x11   :  { %s2616_s28 = smov [#allocation12]   ;;  %s2617_s4 = smov 64  }
  0x12   :  { %s74_s29 = sshll.u32 %s2616_s28, 4  ;;  %s2618_s30 = smov 4   ;;  %s75_s29 = int_to_ptr.vmem [resolvable:$true] %s74_s29 }
  0x13   :  { %80 = dma.hbm_to_vmem [thread:$0]  %s73_s27, 128, %s75_s29, [#allocation13], %s2617_s4, %s2617_s4, %s2618_s30  }
  0x14   :  { %2580 = dma.done.wait [#allocation7], 16  }
  0x15   :  { %2581 = vsyncadd [#allocation7], 4294967280 }
  0x16   :  { %2582 = dma.done.wait [#allocation5], 256  }
  0x17   :  { %2583 = vsyncadd [#allocation5], 4294967040 }
  0x18   :  { %2584 = dma.done.wait [#allocation10], 16640  }
  0x19   :  { %2585 = vsyncadd [#allocation10], 4294950656 }
  0x1a   :  { %2586 = dma.done.wait [#allocation13], 128  }
  0x1b   :  { %2587 = vsyncadd [#allocation13], 4294967168 }
  0x1c   :  { %101 = sfence }
  0x1d   :  { %s102_s9 = sld [smem:[#allocation4]]  ;;  %s2619_s10 = smov [#allocation2]  }
  0x1e   :  { %s113_s11 = sshll.u32 %s2619_s10, 4  ;;  %s1518_s5 = sld [smem:[#allocation4 + $0x1]]  ;;  %s114_s11 = int_to_ptr.vmem [resolvable:$true] %s113_s11 }
  0x1f   :  { %s2620_s12 = smov [#allocation2 + $0x1]   ;;  %s2697_s16 = sld [smem:[#allocation4 + $0x2]] }
  0x20   :  { %s2695_s15 = sshll.u32 %s2620_s12, 4  ;;  %s2621_s17 = smov [#allocation2 + $0x2]   ;;  %s131_s15 = int_to_ptr.vmem [resolvable:$true] %s2695_s15 }
  0x21   :  { %s2700_s3 = sshll.u32 %s2621_s17, 4  ;;  %s2702_s18 = sld [smem:[#allocation4 + $0x3]]  ;;  %s148_s3 = int_to_ptr.vmem [resolvable:$true] %s2700_s3 }
  0x22   :  { %s2714_s29 = scalar_lea.hbm %s2814_s1, 32 }
  0x23   :  { %s103_s21 = scalar_lea.hbm %s2814_s1, %s102_s9 }
  0x24   :  { %s111_s0 = sshll.u32 %s103_s21, 4  ;;  %s118_s24 = scalar_lea.hbm %s2814_s1, %s1518_s5  ;;  %s112_s0 = int_to_ptr.hbm [resolvable:$true] %s111_s0 }
  0x25   :  { %s128_s25 = sshll.u32 %s118_s24, 4  ;;  %s2340_s2 = sshra.s32 %s112_s0, 4  ;;  %s2341_s2 = int_to_ptr.hbm [resolvable:$true] %s2340_s2  ;;  %s129_s25 = int_to_ptr.hbm [resolvable:$true] %s128_s25 }
  0x26   :  { %s2342_s26 = scalar_lea.hbm %s2341_s2, 1  ;;  %p2345_p1 = scmp.lt.s32.totalorder %s2341_s2, %s2814_s1 }
  0x27   :  { %p2343_p0 = scmp.ne.s32.totalorder %s2341_s2, %s2342_s26  ;;  %p2346_p2 = scmp.lt.s32.totalorder %s2714_s29, %s2342_s26 }
  0x29   :  { %p2347_p3 = por %p2346_p2, %p2345_p1 }
  0x2b   :  { %p2348_p4 = pnand %p2347_p3, %p2343_p0 }
  0x2d   :  { %2351 = shalt.err (!%p2348_p4)  }
  0x2e   :  { %116 = dma.hbm_to_vmem [thread:$0]  %s112_s0, 16, %s114_s11, [#allocation3] }
  0x2f   :  { %s135_s5 = scalar_lea.hbm %s2814_s1, %s2697_s16  ;;  %s2364_s12 = sshra.s32 %s129_s25, 4  ;;  %s2365_s12 = int_to_ptr.hbm [resolvable:$true] %s2364_s12 }
  0x30   :  { %s2366_s17 = scalar_lea.hbm %s2365_s12, 1  ;;  %p2369_p6 = scmp.lt.s32.totalorder %s2365_s12, %s2814_s1 }
  0x31   :  { %p2367_p5 = scmp.ne.s32.totalorder %s2365_s12, %s2366_s17  ;;  %p2370_p7 = scmp.lt.s32.totalorder %s2714_s29, %s2366_s17 }
  0x33   :  { %p2371_p8 = por %p2370_p7, %p2369_p6 }
  0x35   :  { %p2372_p9 = pnand %p2371_p8, %p2367_p5 }
  0x37   :  { %2375 = shalt.err (!%p2372_p9)  }
  0x38   :  { %133 = dma.hbm_to_vmem [thread:$0]  %s129_s25, 16, %s131_s15, [#allocation3 + $0x1] }
  0x39   :  { %s145_s11 = sshll.u32 %s135_s5, 4  ;;  %s152_s0 = scalar_lea.hbm %s2814_s1, %s2702_s18  ;;  %s146_s11 = int_to_ptr.hbm [resolvable:$true] %s145_s11 }
  0x3a   :  { %s162_s22 = sshll.u32 %s152_s0, 4  ;;  %s2388_s23 = sshra.s32 %s146_s11, 4  ;;  %s2389_s23 = int_to_ptr.hbm [resolvable:$true] %s2388_s23  ;;  %s163_s22 = int_to_ptr.hbm [resolvable:$true] %s162_s22 }
  0x3b   :  { %s2390_s24 = scalar_lea.hbm %s2389_s23, 1  ;;  %p2393_p11 = scmp.lt.s32.totalorder %s2389_s23, %s2814_s1 }
  0x3c   :  { %p2391_p10 = scmp.ne.s32.totalorder %s2389_s23, %s2390_s24  ;;  %p2394_p12 = scmp.lt.s32.totalorder %s2714_s29, %s2390_s24 }
  0x3e   :  { %p2395_p13 = por %p2394_p12, %p2393_p11 }
  0x40   :  { %p2396_p0 = pnand %p2395_p13, %p2391_p10 }
  0x42   :  { %2399 = shalt.err (!%p2396_p0)  }
  0x43   :  { %150 = dma.hbm_to_vmem [thread:$0]  %s146_s11, 16, %s148_s3, [#allocation3 + $0x2] }
  0x44   :  { %s2622_s15 = smov [#allocation2 + $0x3]   ;;  %s1521_s25 = sld [smem:[#allocation4 + $0x4]] }
  0x45   :  { %s164_s18 = sshll.u32 %s2622_s15, 4  ;;  %s2412_s27 = sshra.s32 %s163_s22, 4  ;;  %s165_s18 = int_to_ptr.vmem [resolvable:$true] %s164_s18  ;;  %s2413_s27 = int_to_ptr.hbm [resolvable:$true] %s2412_s27 }
  0x46   :  { %s2414_s28 = scalar_lea.hbm %s2413_s27, 1  ;;  %p2417_p2 = scmp.lt.s32.totalorder %s2413_s27, %s2814_s1 }
  0x47   :  { %p2415_p1 = scmp.ne.s32.totalorder %s2413_s27, %s2414_s28  ;;  %p2418_p3 = scmp.lt.s32.totalorder %s2714_s29, %s2414_s28 }
  0x49   :  { %p2419_p4 = por %p2418_p3, %p2417_p2 }
  0x4b   :  { %p2420_p5 = pnand %p2419_p4, %p2415_p1 }
  0x4d   :  { %2423 = shalt.err (!%p2420_p5)  }
  0x4e   :  { %167 = dma.hbm_to_vmem [thread:$0]  %s163_s22, 16, %s165_s18, [#allocation3 + $0x3] }
  0x4f   :  { %s2623_s9 = smov [#allocation2 + $0x4]   ;;  %s1522_s10 = sld [smem:[#allocation4 + $0x5]] }
  0x50   :  { %s181_s3 = sshll.u32 %s2623_s9, 4  ;;  %s2624_s5 = smov [#allocation2 + $0x5]   ;;  %s182_s3 = int_to_ptr.vmem [resolvable:$true] %s181_s3 }
  0x51   :  { %s2744_s12 = sshll.u32 %s2624_s5, 4  ;;  %s1523_s17 = sld [smem:[#allocation4 + $0x6]]  ;;  %s199_s12 = int_to_ptr.vmem [resolvable:$true] %s2744_s12 }
  0x52   :  { %s169_s11 = scalar_lea.hbm %s2814_s1, %s1521_s25  ;;  %s2625_s16 = smov [#allocation2 + $0x6]  }
  0x53   :  { %s179_s21 = sshll.u32 %s169_s11, 4  ;;  %s2750_s0 = sshll.u32 %s2625_s16, 4  ;;  %s180_s21 = int_to_ptr.hbm [resolvable:$true] %s179_s21  ;;  %s216_s0 = int_to_ptr.vmem [resolvable:$true] %s2750_s0 }
  0x54   :  { %s2436_s22 = sshra.s32 %s180_s21, 4  ;;  %s2437_s22 = int_to_ptr.hbm [resolvable:$true] %s2436_s22 }
  0x55   :  { %s2438_s23 = scalar_lea.hbm %s2437_s22, 1  ;;  %p2441_p7 = scmp.lt.s32.totalorder %s2437_s22, %s2814_s1 }
  0x56   :  { %p2439_p6 = scmp.ne.s32.totalorder %s2437_s22, %s2438_s23  ;;  %p2442_p8 = scmp.lt.s32.totalorder %s2714_s29, %s2438_s23 }
  0x58   :  { %p2443_p9 = por %p2442_p8, %p2441_p7 }
  0x5a   :  { %p2444_p10 = pnand %p2443_p9, %p2439_p6 }
  0x5c   :  { %2447 = shalt.err (!%p2444_p10)  }
  0x5d   :  { %184 = dma.hbm_to_vmem [thread:$0]  %s180_s21, 16, %s182_s3, [#allocation3 + $0x4] }
  0x5e   :  { %s186_s18 = scalar_lea.hbm %s2814_s1, %s1522_s10  ;;  %s203_s4 = scalar_lea.hbm %s2814_s1, %s1523_s17 }
  0x5f   :  { %s196_s25 = sshll.u32 %s186_s18, 4  ;;  %s213_s30 = sshll.u32 %s203_s4, 4  ;;  %s197_s25 = int_to_ptr.hbm [resolvable:$true] %s196_s25  ;;  %s214_s30 = int_to_ptr.hbm [resolvable:$true] %s213_s30 }
  0x60   :  { %s2460_s9 = sshra.s32 %s197_s25, 4  ;;  %s2461_s9 = int_to_ptr.hbm [resolvable:$true] %s2460_s9 }
  0x61   :  { %s2462_s5 = scalar_lea.hbm %s2461_s9, 1  ;;  %p2465_p12 = scmp.lt.s32.totalorder %s2461_s9, %s2814_s1 }
  0x62   :  { %p2463_p11 = scmp.ne.s32.totalorder %s2461_s9, %s2462_s5  ;;  %p2466_p13 = scmp.lt.s32.totalorder %s2714_s29, %s2462_s5 }
  0x64   :  { %p2467_p0 = por %p2466_p13, %p2465_p12 }
  0x66   :  { %p2468_p1 = pnand %p2467_p0, %p2463_p11 }
  0x68   :  { %2471 = shalt.err (!%p2468_p1)  }
  0x69   :  { %201 = dma.hbm_to_vmem [thread:$0]  %s197_s25, 16, %s199_s12, [#allocation3 + $0x5] }
  0x6a   :  { %s1524_s10 = sld [smem:[#allocation4 + $0x7]]  ;;  %s2484_s17 = sshra.s32 %s214_s30, 4  ;;  %s2485_s17 = int_to_ptr.hbm [resolvable:$true] %s2484_s17 }
  0x6b   :  { %s2486_s20 = scalar_lea.hbm %s2485_s17, 1  ;;  %p2489_p3 = scmp.lt.s32.totalorder %s2485_s17, %s2814_s1 }
  0x6c   :  { %p2487_p2 = scmp.ne.s32.totalorder %s2485_s17, %s2486_s20  ;;  %p2490_p4 = scmp.lt.s32.totalorder %s2714_s29, %s2486_s20 }
  0x6e   :  { %p2491_p5 = por %p2490_p4, %p2489_p3 }
  0x70   :  { %p2492_p6 = pnand %p2491_p5, %p2487_p2 }
  0x72   :  { %2495 = shalt.err (!%p2492_p6)  }
  0x73   :  { %218 = dma.hbm_to_vmem [thread:$0]  %s214_s30, 16, %s216_s0, [#allocation3 + $0x6] }
  0x74   :  { %s2626_s16 = smov [#allocation2 + $0x7]   ;;  %s220_s24 = scalar_lea.hbm %s2814_s1, %s1524_s10 }
  0x75   :  { %s232_s22 = sshll.u32 %s2626_s16, 4  ;;  %s230_s2 = sshll.u32 %s220_s24, 4  ;;  %s233_s22 = int_to_ptr.vmem [resolvable:$true] %s232_s22  ;;  %s231_s2 = int_to_ptr.hbm [resolvable:$true] %s230_s2 }
  0x76   :  { %s2508_s26 = sshra.s32 %s231_s2, 4  ;;  %s2509_s26 = int_to_ptr.hbm [resolvable:$true] %s2508_s26 }
  0x77   :  { %s2510_s15 = scalar_lea.hbm %s2509_s26, 1  ;;  %p2513_p8 = scmp.lt.s32.totalorder %s2509_s26, %s2814_s1 }
  0x78   :  { %p2511_p7 = scmp.ne.s32.totalorder %s2509_s26, %s2510_s15  ;;  %p2514_p9 = scmp.lt.s32.totalorder %s2714_s29, %s2510_s15 }
  0x7a   :  { %p2515_p10 = por %p2514_p9, %p2513_p8 }
  0x7c   :  { %p2516_p11 = pnand %p2515_p10, %p2511_p7 }
  0x7e   :  { %2519 = shalt.err (!%p2516_p11)  }
  0x7f   :  { %235 = dma.hbm_to_vmem [thread:$0]  %s231_s2, 16, %s233_s22, [#allocation3 + $0x7] }
  0x80   :  { %2588 = dma.done.wait [#allocation3], 16 }
  0x81   :  { %2589 = vsyncadd [#allocation3], 4294967280 }
  0x82   :  { %2590 = dma.done.wait [#allocation3 + $0x1], 16 }
  0x83   :  { %2591 = vsyncadd [#allocation3 + $0x1], 4294967280 }
  0x84   :  { %2592 = dma.done.wait [#allocation3 + $0x2], 16 }
  0x85   :  { %2593 = vsyncadd [#allocation3 + $0x2], 4294967280 }
  0x86   :  { %2594 = dma.done.wait [#allocation3 + $0x3], 16 }
  0x87   :  { %2595 = vsyncadd [#allocation3 + $0x3], 4294967280 }
  0x88   :  { %2596 = dma.done.wait [#allocation3 + $0x4], 16 }
  0x89   :  { %2597 = vsyncadd [#allocation3 + $0x4], 4294967280 }
  0x8a   :  { %2598 = dma.done.wait [#allocation3 + $0x5], 16 }
  0x8b   :  { %2599 = vsyncadd [#allocation3 + $0x5], 4294967280 }
  0x8c   :  { %2600 = dma.done.wait [#allocation3 + $0x6], 16 }
  0x8d   :  { %2601 = vsyncadd [#allocation3 + $0x6], 4294967280 }
  0x8e   :  { %2602 = dma.done.wait [#allocation3 + $0x7], 16 }
  0x8f   :  { %2603 = vsyncadd [#allocation3 + $0x7], 4294967280  ;;  %v1639_v0 = vld [vmem:[#allocation11 + $0x1e0] sm:$0xf]  ;;  %v2113_v1 = vld [vmem:[#allocation11 + $0x1ec] sm:$0xf0] }
  0x90   :  { %v2111_v2 = vld [vmem:[#allocation11 + $0x1e4] sm:$0xf]  ;;  %v1640_v3 = vor.u32 %v2113_v1, %v1639_v0  ;;  %v1641_v4 = vld [vmem:[#allocation11 + $0x1f0] sm:$0xf0]  ;;  %v1647_v5 = vld [vmem:[#allocation11 + $0x1e8] sm:$0xf] }
  0x91   :  { %v2114_v6 = vld [vmem:[#allocation11 + $0x1f4] sm:$0xf0]  ;;  %v1644_v7 = vor.u32 %v2111_v2, %v1641_v4  ;;  %v2112_v9 = vld [vmem:[#allocation11 + $0x1ec] sm:$0xf]  ;;  %v1649_v10 = vld [vmem:[#allocation11 + $0x1f8] sm:$0xf0] }
  0x92   :  { %v1648_v8 = vor.u32 %v2114_v6, %v1647_v5  ;;  %v1623_v11 = vld [vmem:[#allocation11 + $0x1c0] sm:$0xf]  ;;  %490 = vmatpush.bf16.msra.mxu0 %v1640_v3  ;;  %v1652_v12 = vor.u32 %v2112_v9, %v1649_v10  ;;  %v2109_v13 = vld [vmem:[#allocation11 + $0x1cc] sm:$0xf0]  ;;  %v2107_v14 = vld [vmem:[#allocation11 + $0x1c4] sm:$0xf] }
  0x93   :  { %v1625_v15 = vld [vmem:[#allocation11 + $0x1d0] sm:$0xf0]  ;;  %503 = vmatpush.bf16.msra.mxu1 %v1644_v7  ;;  %v1624_v16 = vor.u32 %v2109_v13, %v1623_v11  ;;  %v1631_v18 = vld [vmem:[#allocation11 + $0x1c8] sm:$0xf]  ;;  %v2110_v19 = vld [vmem:[#allocation11 + $0x1d4] sm:$0xf0] }
  0x94   :  { %516 = vmatpush.bf16.msra.mxu2 %v1648_v8  ;;  %v1628_v17 = vor.u32 %v2107_v14, %v1625_v15  ;;  %v2108_v20 = vld [vmem:[#allocation11 + $0x1cc] sm:$0xf]  ;;  %529 = vmatpush.bf16.msra.mxu3 %v1652_v12  ;;  %v1632_v21 = vor.u32 %v2110_v19, %v1631_v18  ;;  %v1633_v22 = vld [vmem:[#allocation11 + $0x1d8] sm:$0xf0]  ;;  %v1607_v23 = vld [vmem:[#allocation11 + $0x1a0] sm:$0xf] }
  0x95   :  { %v2105_v24 = vld [vmem:[#allocation11 + $0x1ac] sm:$0xf0]  ;;  %v1636_v25 = vor.u32 %v2108_v20, %v1633_v22  ;;  %v2103_v26 = vld [vmem:[#allocation11 + $0x1a4] sm:$0xf]  ;;  %v1609_v27 = vld [vmem:[#allocation11 + $0x1b0] sm:$0xf0] }
  0x96   :  { %v1615_v28 = vld [vmem:[#allocation11 + $0x1a8] sm:$0xf]  ;;  %491 = vmatpush.bf16.msra.mxu0 %v1624_v16  ;;  %v1608_v29 = vor.u32 %v2105_v24, %v1607_v23  ;;  %v2106_v30 = vld [vmem:[#allocation11 + $0x1b4] sm:$0xf0]  ;;  %v2104_v31 = vld [vmem:[#allocation11 + $0x1ac] sm:$0xf]  ;;  %v1612_v33 = vor.u32 %v2103_v26, %v1609_v27 }
  0x97   :  { %v1617_v32 = vld [vmem:[#allocation11 + $0x1b8] sm:$0xf0]  ;;  %504 = vmatpush.bf16.msra.mxu1 %v1628_v17  ;;  %v1616_v34 = vor.u32 %v2106_v30, %v1615_v28  ;;  %v1591_v35 = vld [vmem:[#allocation11 + $0x180] sm:$0xf]  ;;  %v2101_v36 = vld [vmem:[#allocation11 + $0x18c] sm:$0xf0] }
  0x98   :  { %517 = vmatpush.bf16.msra.mxu2 %v1632_v21  ;;  %v2099_v37 = vld [vmem:[#allocation11 + $0x184] sm:$0xf]  ;;  %530 = vmatpush.bf16.msra.mxu3 %v1636_v25  ;;  %v1620_v38 = vor.u32 %v2104_v31, %v1617_v32  ;;  %v1593_v39 = vld [vmem:[#allocation11 + $0x190] sm:$0xf0]  ;;  %v1599_v40 = vld [vmem:[#allocation11 + $0x188] sm:$0xf]  ;;  %v1592_v44 = vor.u32 %v2101_v36, %v1591_v35 }
  0x99   :  { %v2102_v41 = vld [vmem:[#allocation11 + $0x194] sm:$0xf0]  ;;  %v2100_v42 = vld [vmem:[#allocation11 + $0x18c] sm:$0xf]  ;;  %v1601_v43 = vld [vmem:[#allocation11 + $0x198] sm:$0xf0]  ;;  %v1596_v45 = vor.u32 %v2099_v37, %v1593_v39 }
  0x9a   :  { %492 = vmatpush.bf16.msra.mxu0 %v1608_v29  ;;  %v1600_v46 = vor.u32 %v2102_v41, %v1599_v40  ;;  %v1575_v47 = vld [vmem:[#allocation11 + $0x160] sm:$0xf]  ;;  %v2097_v48 = vld [vmem:[#allocation11 + $0x16c] sm:$0xf0]  ;;  %v2095_v49 = vld [vmem:[#allocation11 + $0x164] sm:$0xf]  ;;  %v1604_v50 = vor.u32 %v2100_v42, %v1601_v43 }
  0x9b   :  { %505 = vmatpush.bf16.msra.mxu1 %v1612_v33  ;;  %v1577_v51 = vld [vmem:[#allocation11 + $0x170] sm:$0xf0]  ;;  %v1583_v52 = vld [vmem:[#allocation11 + $0x168] sm:$0xf]  ;;  %v2098_v53 = vld [vmem:[#allocation11 + $0x174] sm:$0xf0]  ;;  %v1576_v56 = vor.u32 %v2097_v48, %v1575_v47 }
  0x9c   :  { %518 = vmatpush.bf16.msra.mxu2 %v1616_v34  ;;  %531 = vmatpush.bf16.msra.mxu3 %v1620_v38  ;;  %v2096_v54 = vld [vmem:[#allocation11 + $0x16c] sm:$0xf]  ;;  %v1585_v55 = vld [vmem:[#allocation11 + $0x178] sm:$0xf0]  ;;  %v1580_v57 = vor.u32 %v2095_v49, %v1577_v51  ;;  %v1584_v58 = vor.u32 %v2098_v53, %v1583_v52  ;;  %v1559_v59 = vld [vmem:[#allocation11 + $0x140] sm:$0xf] }
  0x9d   :  { %v2093_v60 = vld [vmem:[#allocation11 + $0x14c] sm:$0xf0]  ;;  %v2091_v61 = vld [vmem:[#allocation11 + $0x144] sm:$0xf]  ;;  %v1588_v62 = vor.u32 %v2096_v54, %v1585_v55  ;;  %v1561_v63 = vld [vmem:[#allocation11 + $0x150] sm:$0xf0] }
  0x9e   :  { %493 = vmatpush.bf16.msra.mxu0 %v1592_v44  ;;  %v1567_v0 = vld [vmem:[#allocation11 + $0x148] sm:$0xf]  ;;  %v2094_v1 = vld [vmem:[#allocation11 + $0x154] sm:$0xf0]  ;;  %v2092_v2 = vld [vmem:[#allocation11 + $0x14c] sm:$0xf]  ;;  %v1560_v4 = vor.u32 %v2093_v60, %v1559_v59  ;;  %v1564_v5 = vor.u32 %v2091_v61, %v1561_v63 }
  0x9f   :  { %506 = vmatpush.bf16.msra.mxu1 %v1596_v45  ;;  %v1569_v3 = vld [vmem:[#allocation11 + $0x158] sm:$0xf0]  ;;  %v1568_v6 = vor.u32 %v2094_v1, %v1567_v0  ;;  %v1543_v7 = vld [vmem:[#allocation11 + $0x120] sm:$0xf]  ;;  %v2089_v8 = vld [vmem:[#allocation11 + $0x12c] sm:$0xf0] }
  0xa0   :  { %519 = vmatpush.bf16.msra.mxu2 %v1600_v46  ;;  %532 = vmatpush.bf16.msra.mxu3 %v1604_v50  ;;  %v2087_v9 = vld [vmem:[#allocation11 + $0x124] sm:$0xf]  ;;  %v1572_v10 = vor.u32 %v2092_v2, %v1569_v3  ;;  %v1545_v11 = vld [vmem:[#allocation11 + $0x130] sm:$0xf0]  ;;  %v1551_v12 = vld [vmem:[#allocation11 + $0x128] sm:$0xf]  ;;  %v1544_v16 = vor.u32 %v2089_v8, %v1543_v7 }
  0xa1   :  { %v2090_v13 = vld [vmem:[#allocation11 + $0x134] sm:$0xf0]  ;;  %v2088_v14 = vld [vmem:[#allocation11 + $0x12c] sm:$0xf]  ;;  %v1553_v15 = vld [vmem:[#allocation11 + $0x138] sm:$0xf0]  ;;  %v1548_v19 = vor.u32 %v2087_v9, %v1545_v11 }
  0xa2   :  { %494 = vmatpush.bf16.msra.mxu0 %v1576_v56  ;;  %v1527_v17 = vld [vmem:[#allocation11 + $0x100] sm:$0xf]  ;;  %v2085_v18 = vld [vmem:[#allocation11 + $0x10c] sm:$0xf0]  ;;  %v1552_v20 = vor.u32 %v2090_v13, %v1551_v12  ;;  %v2083_v21 = vld [vmem:[#allocation11 + $0x104] sm:$0xf]  ;;  %v1556_v24 = vor.u32 %v2088_v14, %v1553_v15 }
  0xa3   :  { %507 = vmatpush.bf16.msra.mxu1 %v1580_v57  ;;  %v1529_v22 = vld [vmem:[#allocation11 + $0x110] sm:$0xf0]  ;;  %v1535_v23 = vld [vmem:[#allocation11 + $0x108] sm:$0xf]  ;;  %v2086_v25 = vld [vmem:[#allocation11 + $0x114] sm:$0xf0]  ;;  %v1528_v31 = vor.u32 %v2085_v18, %v1527_v17 }
  0xa4   :  { %520 = vmatpush.bf16.msra.mxu2 %v1584_v58  ;;  %533 = vmatpush.bf16.msra.mxu3 %v1588_v62  ;;  %v2084_v26 = vld [vmem:[#allocation11 + $0x10c] sm:$0xf]  ;;  %v1537_v27 = vld [vmem:[#allocation11 + $0x118] sm:$0xf0]  ;;  %v1767_v28 = vld [vmem:[#allocation11 + $0xe0] sm:$0xf]  ;;  %v1532_v35 = vor.u32 %v2083_v21, %v1529_v22  ;;  %v1536_v36 = vor.u32 %v2086_v25, %v1535_v23 }
  0xa5   :  { %v2081_v29 = vld [vmem:[#allocation11 + $0xec] sm:$0xf0]  ;;  %v2079_v30 = vld [vmem:[#allocation11 + $0xe4] sm:$0xf]  ;;  %v1769_v32 = vld [vmem:[#allocation11 + $0xf0] sm:$0xf0]  ;;  %v1540_v40 = vor.u32 %v2084_v26, %v1537_v27 }
  0xa6   :  { %495 = vmatpush.bf16.msra.mxu0 %v1560_v4  ;;  %v1775_v33 = vld [vmem:[#allocation11 + $0xe8] sm:$0xf]  ;;  %v2082_v34 = vld [vmem:[#allocation11 + $0xf4] sm:$0xf0]  ;;  %v2080_v37 = vld [vmem:[#allocation11 + $0xec] sm:$0xf]  ;;  %v1768_v41 = vor.u32 %v2081_v29, %v1767_v28  ;;  %v1772_v42 = vor.u32 %v2079_v30, %v1769_v32 }
  0xa7   :  { %508 = vmatpush.bf16.msra.mxu1 %v1564_v5  ;;  %v1777_v38 = vld [vmem:[#allocation11 + $0xf8] sm:$0xf0]  ;;  %v263_v39 = vld [vmem:[#allocation8] sm:$0xff]  ;;  %v1776_v43 = vor.u32 %v2082_v34, %v1775_v33  ;;  %v2077_v45 = vld [vmem:[#allocation11 + $0xcc] sm:$0xf0]  ;;  %s2627_s1 = smov [#allocation15]  }
  0xa8   :  { %521 = vmatpush.bf16.msra.mxu2 %v1568_v6  ;;  %534 = vmatpush.bf16.msra.mxu3 %v1572_v10  ;;  %v1751_v44 = vld [vmem:[#allocation11 + $0xc0] sm:$0xf]  ;;  %v2075_v46 = vld [vmem:[#allocation11 + $0xc4] sm:$0xf]  ;;  %v1780_v47 = vor.u32 %v2080_v37, %v1777_v38  ;;  %v1753_v48 = vld [vmem:[#allocation11 + $0xd0] sm:$0xf0]  ;;  %v297_v51 = vpack.c.bf16 %v263_v39, %v263_v39 }
  0xa9   :  { %v1759_v49 = vld [vmem:[#allocation11 + $0xc8] sm:$0xf]  ;;  %v2078_v50 = vld [vmem:[#allocation11 + $0xd4] sm:$0xf0]  ;;  %v2076_v52 = vld [vmem:[#allocation11 + $0xcc] sm:$0xf]  ;;  %v1752_v54 = vor.u32 %v2077_v45, %v1751_v44  ;;  %v1756_v55 = vor.u32 %v2075_v46, %v1753_v48 }
  0xaa   :  { %496 = vmatpush.bf16.msra.mxu0 %v1544_v16  ;;  %v1761_v53 = vld [vmem:[#allocation11 + $0xd8] sm:$0xf0]  ;;  %v1760_v56 = vor.u32 %v2078_v50, %v1759_v49  ;;  %v1735_v57 = vld [vmem:[#allocation11 + $0xa0] sm:$0xf]  ;;  %v2073_v58 = vld [vmem:[#allocation11 + $0xac] sm:$0xf0] }
  0xab   :  { %509 = vmatpush.bf16.msra.mxu1 %v1548_v19  ;;  %v2071_v59 = vld [vmem:[#allocation11 + $0xa4] sm:$0xf]  ;;  %v1764_v60 = vor.u32 %v2076_v52, %v1761_v53  ;;  %v1737_v61 = vld [vmem:[#allocation11 + $0xb0] sm:$0xf0]  ;;  %v1743_v62 = vld [vmem:[#allocation11 + $0xa8] sm:$0xf]  ;;  %v1736_v2 = vor.u32 %v2073_v58, %v1735_v57 }
  0xac   :  { %522 = vmatpush.bf16.msra.mxu2 %v1552_v20  ;;  %535 = vmatpush.bf16.msra.mxu3 %v1556_v24  ;;  %v2074_v63 = vld [vmem:[#allocation11 + $0xb4] sm:$0xf0]  ;;  %v2072_v0 = vld [vmem:[#allocation11 + $0xac] sm:$0xf]  ;;  %v1745_v1 = vld [vmem:[#allocation11 + $0xb8] sm:$0xf0]  ;;  %v1740_v3 = vor.u32 %v2071_v59, %v1737_v61 }
  0xad   :  { %v1744_v4 = vor.u32 %v2074_v63, %v1743_v62  ;;  %v1719_v5 = vld [vmem:[#allocation11 + $0x80] sm:$0xf]  ;;  %v2069_v6 = vld [vmem:[#allocation11 + $0x8c] sm:$0xf0]  ;;  %v2067_v7 = vld [vmem:[#allocation11 + $0x84] sm:$0xf]  ;;  %v1748_v8 = vor.u32 %v2072_v0, %v1745_v1 }
  0xae   :  { %497 = vmatpush.bf16.msra.mxu0 %v1528_v31  ;;  %v1721_v9 = vld [vmem:[#allocation11 + $0x90] sm:$0xf0]  ;;  %v1727_v10 = vld [vmem:[#allocation11 + $0x88] sm:$0xf]  ;;  %v2070_v11 = vld [vmem:[#allocation11 + $0x94] sm:$0xf0]  ;;  %v1720_v14 = vor.u32 %v2069_v6, %v1719_v5 }
  0xaf   :  { %510 = vmatpush.bf16.msra.mxu1 %v1532_v35  ;;  %v2068_v12 = vld [vmem:[#allocation11 + $0x8c] sm:$0xf]  ;;  %v1729_v13 = vld [vmem:[#allocation11 + $0x98] sm:$0xf0]  ;;  %v1724_v15 = vor.u32 %v2067_v7, %v1721_v9  ;;  %v1728_v16 = vor.u32 %v2070_v11, %v1727_v10  ;;  %v1703_v17 = vld [vmem:[#allocation11 + $0x60] sm:$0xf] }
  0xb0   :  { %523 = vmatpush.bf16.msra.mxu2 %v1536_v36  ;;  %536 = vmatpush.bf16.msra.mxu3 %v1540_v40  ;;  %v2065_v18 = vld [vmem:[#allocation11 + $0x6c] sm:$0xf0]  ;;  %v2063_v19 = vld [vmem:[#allocation11 + $0x64] sm:$0xf]  ;;  %v1732_v20 = vor.u32 %v2068_v12, %v1729_v13  ;;  %v1705_v21 = vld [vmem:[#allocation11 + $0x70] sm:$0xf0] }
  0xb1   :  { %498 = vmatmul.bf16.vlgmr.msra.gmra.mxu0 %v297_v51  ;;  %v1711_v22 = vld [vmem:[#allocation11 + $0x68] sm:$0xf]  ;;  %v2066_v23 = vld [vmem:[#allocation11 + $0x74] sm:$0xf0]  ;;  %v2064_v24 = vld [vmem:[#allocation11 + $0x6c] sm:$0xf]  ;;  %v1704_v26 = vor.u32 %v2065_v18, %v1703_v17  ;;  %v1708_v27 = vor.u32 %v2063_v19, %v1705_v21 }
  0xb2   :  { %702 = vmatpush.bf16.msrb.mxu0 %v1768_v41  ;;  %511 = vmatmul.bf16.vlgmr.msra.gmra.mxu1 %v297_v51  ;;  %v1713_v25 = vld [vmem:[#allocation11 + $0x78] sm:$0xf0]  ;;  %v1712_v28 = vor.u32 %v2066_v23, %v1711_v22  ;;  %v1687_v29 = vld [vmem:[#allocation11 + $0x40] sm:$0xf]  ;;  %v2061_v30 = vld [vmem:[#allocation11 + $0x4c] sm:$0xf0] }
  0xb3   :  { %715 = vmatpush.bf16.msrb.mxu1 %v1772_v42  ;;  %537 = vmatmul.bf16.vlgmr.msra.gmra.mxu3 %v297_v51  ;;  %v2059_v31 = vld [vmem:[#allocation11 + $0x44] sm:$0xf]  ;;  %v1716_v32 = vor.u32 %v2064_v24, %v1713_v25  ;;  %v1689_v33 = vld [vmem:[#allocation11 + $0x50] sm:$0xf0]  ;;  %v1695_v34 = vld [vmem:[#allocation11 + $0x48] sm:$0xf]  ;;  %v1688_v38 = vor.u32 %v2061_v30, %v1687_v29 }
  0xb4   :  { %728 = vmatpush.bf16.msrb.mxu2 %v1776_v43  ;;  %741 = vmatpush.bf16.msrb.mxu3 %v1780_v47  ;;  %v2062_v35 = vld [vmem:[#allocation11 + $0x54] sm:$0xf0]  ;;  %v2060_v36 = vld [vmem:[#allocation11 + $0x4c] sm:$0xf]  ;;  %v1697_v37 = vld [vmem:[#allocation11 + $0x58] sm:$0xf0]  ;;  %v1692_v39 = vor.u32 %v2059_v31, %v1689_v33 }
  0xb5   :  { %524 = vmatmul.bf16.vlgmr.msra.gmra.mxu2 %v297_v51  ;;  %v1696_v40 = vor.u32 %v2062_v35, %v1695_v34  ;;  %v1671_v41 = vld [vmem:[#allocation11 + $0x20] sm:$0xf]  ;;  %v2057_v42 = vld [vmem:[#allocation11 + $0x2c] sm:$0xf0]  ;;  %v2055_v43 = vld [vmem:[#allocation11 + $0x24] sm:$0xf]  ;;  %v1700_v44 = vor.u32 %v2060_v36, %v1697_v37 }
  0xb6   :  { %703 = vmatpush.bf16.msrb.mxu0 %v1752_v54  ;;  %v1673_v45 = vld [vmem:[#allocation11 + $0x30] sm:$0xf0]  ;;  %v1679_v46 = vld [vmem:[#allocation11 + $0x28] sm:$0xf]  ;;  %v2058_v47 = vld [vmem:[#allocation11 + $0x34] sm:$0xf0]  ;;  %v1672_v50 = vor.u32 %v2057_v42, %v1671_v41 }
  0xb7   :  { %716 = vmatpush.bf16.msrb.mxu1 %v1756_v55  ;;  %v2056_v48 = vld [vmem:[#allocation11 + $0x2c] sm:$0xf]  ;;  %v1681_v49 = vld [vmem:[#allocation11 + $0x38] sm:$0xf0]  ;;  %v1676_v51 = vor.u32 %v2055_v43, %v1673_v45  ;;  %v1680_v52 = vor.u32 %v2058_v47, %v1679_v46  ;;  %v1655_v53 = vld [vmem:[#allocation11] sm:$0xf] }
  0xb8   :  { %729 = vmatpush.bf16.msrb.mxu2 %v1760_v56  ;;  %742 = vmatpush.bf16.msrb.mxu3 %v1764_v60  ;;  %v2053_v54 = vld [vmem:[#allocation11 + $0xc] sm:$0xf0]  ;;  %v2051_v55 = vld [vmem:[#allocation11 + $0x4] sm:$0xf]  ;;  %v1684_v56 = vor.u32 %v2056_v48, %v1681_v49  ;;  %v1657_v57 = vld [vmem:[#allocation11 + $0x10] sm:$0xf0] }
  0xb9   :  { %v1663_v58 = vld [vmem:[#allocation11 + $0x8] sm:$0xf]  ;;  %v2054_v59 = vld [vmem:[#allocation11 + $0x14] sm:$0xf0]  ;;  %v2052_v60 = vld [vmem:[#allocation11 + $0xc] sm:$0xf]  ;;  %v1656_v62 = vor.u32 %v2053_v54, %v1655_v53  ;;  %v1660_v0 = vor.u32 %v2051_v55, %v1657_v57 }
  0xba   :  { %704 = vmatpush.bf16.msrb.mxu0 %v1736_v2  ;;  %v1665_v61 = vld [vmem:[#allocation11 + $0x18] sm:$0xf0]  ;;  %v1664_v1 = vor.u32 %v2054_v59, %v1663_v58  ;;  %v2177_v5 = vld [vmem:[#allocation11 + $0x3ec] sm:$0xf0]  ;;  %v2175_v6 = vld [vmem:[#allocation11 + $0x3e4] sm:$0xf] }
  0xbb   :  { %717 = vmatpush.bf16.msrb.mxu1 %v1740_v3  ;;  %v261_v63 = vld [vmem:[#allocation2] sm:$0xff]  ;;  %v1668_v2 = vor.u32 %v2052_v60, %v1665_v61  ;;  %v1906_v9 = vld [vmem:[#allocation11 + $0x3e8] sm:$0xf]  ;;  %v2176_v13 = vld [vmem:[#allocation11 + $0x3ec] sm:$0xf]  ;;  %s1428_s29 = sshll.u32 %s2627_s1, 4  ;;  %s1429_s29 = int_to_ptr.vmem [resolvable:$true] %s1428_s29 }
  0xbc   :  { %730 = vmatpush.bf16.msrb.mxu2 %v1744_v4  ;;  %743 = vmatpush.bf16.msrb.mxu3 %v1748_v8  ;;  %v262_v3 = vpack.c.bf16 %v261_v63, %v261_v63  ;;  %v1898_v4 = vld [vmem:[#allocation11 + $0x3e0] sm:$0xf]  ;;  %v1900_v8 = vld [vmem:[#allocation11 + $0x3f0] sm:$0xf0]  ;;  %v2178_v10 = vld [vmem:[#allocation11 + $0x3f4] sm:$0xf0] }
  0xbd   :  { %v1899_v7 = vor.u32 %v2177_v5, %v1898_v4  ;;  %v1903_v11 = vor.u32 %v2175_v6, %v1900_v8  ;;  %v1907_v12 = vor.u32 %v2178_v10, %v1906_v9  ;;  %v2173_v17 = vld [vmem:[#allocation11 + $0x3cc] sm:$0xf0]  ;;  %v2171_v18 = vld [vmem:[#allocation11 + $0x3c4] sm:$0xf]  ;;  %v1884_v19 = vld [vmem:[#allocation11 + $0x3d0] sm:$0xf0] }
  0xbe   :  { %705 = vmatpush.bf16.msrb.mxu0 %v1720_v14  ;;  %v1908_v14 = vld [vmem:[#allocation11 + $0x3f8] sm:$0xf0]  ;;  %v1887_v21 = vor.u32 %v2171_v18, %v1884_v19  ;;  %v1890_v22 = vld [vmem:[#allocation11 + $0x3c8] sm:$0xf]  ;;  %v2174_v23 = vld [vmem:[#allocation11 + $0x3d4] sm:$0xf0] }
  0xbf   :  { %718 = vmatpush.bf16.msrb.mxu1 %v1724_v15  ;;  %v1882_v15 = vld [vmem:[#allocation11 + $0x3c0] sm:$0xf]  ;;  %v2172_v24 = vld [vmem:[#allocation11 + $0x3cc] sm:$0xf]  ;;  %v1891_v25 = vor.u32 %v2174_v23, %v1890_v22  ;;  %v2169_v29 = vld [vmem:[#allocation11 + $0x3ac] sm:$0xf0] }
  0xc0   :  { %731 = vmatpush.bf16.msrb.mxu2 %v1728_v16  ;;  %744 = vmatpush.bf16.msrb.mxu3 %v1732_v20  ;;  %v1911_v16 = vor.u32 %v2176_v13, %v1908_v14  ;;  %v1883_v20 = vor.u32 %v2173_v17, %v1882_v15  ;;  %v2167_v30 = vld [vmem:[#allocation11 + $0x3a4] sm:$0xf]  ;;  %v1874_v33 = vld [vmem:[#allocation11 + $0x3a8] sm:$0xf]  ;;  %v2170_v34 = vld [vmem:[#allocation11 + $0x3b4] sm:$0xf0] }
  0xc1   :  { %v1875_v36 = vor.u32 %v2170_v34, %v1874_v33  ;;  %v2168_v37 = vld [vmem:[#allocation11 + $0x3ac] sm:$0xf]  ;;  %v2165_v41 = vld [vmem:[#allocation11 + $0x38c] sm:$0xf0]  ;;  %v2163_v42 = vld [vmem:[#allocation11 + $0x384] sm:$0xf] }
  0xc2   :  { %706 = vmatpush.bf16.msrb.mxu0 %v1704_v26  ;;  %v1892_v26 = vld [vmem:[#allocation11 + $0x3d8] sm:$0xf0]  ;;  %v1858_v45 = vld [vmem:[#allocation11 + $0x388] sm:$0xf]  ;;  %v2166_v46 = vld [vmem:[#allocation11 + $0x394] sm:$0xf0] }
  0xc3   :  { %719 = vmatpush.bf16.msrb.mxu1 %v1708_v27  ;;  %v1895_v27 = vor.u32 %v2172_v24, %v1892_v26  ;;  %v1859_v48 = vor.u32 %v2166_v46, %v1858_v45  ;;  %v2164_v49 = vld [vmem:[#allocation11 + $0x38c] sm:$0xf]  ;;  %v1834_v53 = vld [vmem:[#allocation11 + $0x360] sm:$0xf]  ;;  %v2161_v54 = vld [vmem:[#allocation11 + $0x36c] sm:$0xf0] }
  0xc4   :  { %732 = vmatpush.bf16.msrb.mxu2 %v1712_v28  ;;  %745 = vmatpush.bf16.msrb.mxu3 %v1716_v32  ;;  %v1866_v28 = vld [vmem:[#allocation11 + $0x3a0] sm:$0xf]  ;;  %v1868_v32 = vld [vmem:[#allocation11 + $0x3b0] sm:$0xf0]  ;;  %v2159_v57 = vld [vmem:[#allocation11 + $0x364] sm:$0xf] }
  0xc5   :  { %v1867_v31 = vor.u32 %v2169_v29, %v1866_v28  ;;  %v1871_v35 = vor.u32 %v2167_v30, %v1868_v32  ;;  %v1836_v58 = vld [vmem:[#allocation11 + $0x370] sm:$0xf0]  ;;  %v1842_v59 = vld [vmem:[#allocation11 + $0x368] sm:$0xf]  ;;  %v2162_v61 = vld [vmem:[#allocation11 + $0x374] sm:$0xf0] }
  0xc6   :  { %707 = vmatpush.bf16.msrb.mxu0 %v1688_v38  ;;  %v1876_v38 = vld [vmem:[#allocation11 + $0x3b8] sm:$0xf0]  ;;  %v1839_v60 = vor.u32 %v2159_v57, %v1836_v58  ;;  %v2155_v4 = vld [vmem:[#allocation11 + $0x344] sm:$0xf]  ;;  %v1820_v6 = vld [vmem:[#allocation11 + $0x350] sm:$0xf0] }
  0xc7   :  { %720 = vmatpush.bf16.msrb.mxu1 %v1692_v39  ;;  %v1879_v39 = vor.u32 %v2168_v37, %v1876_v38  ;;  %v1844_v63 = vld [vmem:[#allocation11 + $0x378] sm:$0xf0]  ;;  %v2158_v8 = vld [vmem:[#allocation11 + $0x354] sm:$0xf0]  ;;  %v1823_v9 = vor.u32 %v2155_v4, %v1820_v6  ;;  %v1802_v17 = vld [vmem:[#allocation11 + $0x320] sm:$0xf] }
  0xc8   :  { %733 = vmatpush.bf16.msrb.mxu2 %v1696_v40  ;;  %746 = vmatpush.bf16.msrb.mxu3 %v1700_v44  ;;  %v1850_v40 = vld [vmem:[#allocation11 + $0x380] sm:$0xf]  ;;  %v1852_v44 = vld [vmem:[#allocation11 + $0x390] sm:$0xf0]  ;;  %v2153_v18 = vld [vmem:[#allocation11 + $0x32c] sm:$0xf0] }
  0xc9   :  { %v1851_v43 = vor.u32 %v2165_v41, %v1850_v40  ;;  %v1855_v47 = vor.u32 %v2163_v42, %v1852_v44  ;;  %v2151_v19 = vld [vmem:[#allocation11 + $0x324] sm:$0xf]  ;;  %v1804_v22 = vld [vmem:[#allocation11 + $0x330] sm:$0xf0]  ;;  %v1810_v23 = vld [vmem:[#allocation11 + $0x328] sm:$0xf] }
  0xca   :  { %708 = vmatpush.bf16.msrb.mxu0 %v1672_v50  ;;  %v1860_v50 = vld [vmem:[#allocation11 + $0x398] sm:$0xf0]  ;;  %v2154_v24 = vld [vmem:[#allocation11 + $0x334] sm:$0xf0]  ;;  %v1786_v30 = vld [vmem:[#allocation11 + $0x300] sm:$0xf] }
  0xcb   :  { %721 = vmatpush.bf16.msrb.mxu1 %v1676_v51  ;;  %v1863_v51 = vor.u32 %v2164_v49, %v1860_v50  ;;  %v1811_v26 = vor.u32 %v2154_v24, %v1810_v23  ;;  %v1812_v28 = vld [vmem:[#allocation11 + $0x338] sm:$0xf0]  ;;  %v2147_v32 = vld [vmem:[#allocation11 + $0x304] sm:$0xf]  ;;  %v1788_v34 = vld [vmem:[#allocation11 + $0x310] sm:$0xf0] }
  0xcc   :  { %734 = vmatpush.bf16.msrb.mxu2 %v1680_v52  ;;  %747 = vmatpush.bf16.msrb.mxu3 %v1684_v56  ;;  %v1835_v56 = vor.u32 %v2161_v54, %v1834_v53  ;;  %v1791_v37 = vor.u32 %v2147_v32, %v1788_v34  ;;  %v1796_v40 = vld [vmem:[#allocation11 + $0x318] sm:$0xf0]  ;;  %v2026_v41 = vld [vmem:[#allocation11 + $0x2e0] sm:$0xf]  ;;  %v2145_v44 = vld [vmem:[#allocation11 + $0x2ec] sm:$0xf0] }
  0xcd   :  { %v2143_v45 = vld [vmem:[#allocation11 + $0x2e4] sm:$0xf]  ;;  %v2028_v46 = vld [vmem:[#allocation11 + $0x2f0] sm:$0xf0]  ;;  %v2034_v50 = vld [vmem:[#allocation11 + $0x2e8] sm:$0xf] }
  0xce   :  { %709 = vmatpush.bf16.msrb.mxu0 %v1656_v62  ;;  %v2160_v62 = vld [vmem:[#allocation11 + $0x36c] sm:$0xf]  ;;  %v2031_v49 = vor.u32 %v2143_v45, %v2028_v46  ;;  %v2010_v57 = vld [vmem:[#allocation11 + $0x2c0] sm:$0xf]  ;;  %v2141_v58 = vld [vmem:[#allocation11 + $0x2cc] sm:$0xf0] }
  0xcf   :  { %722 = vmatpush.bf16.msrb.mxu1 %v1660_v0  ;;  %v1843_v0 = vor.u32 %v2162_v61, %v1842_v59  ;;  %v2144_v53 = vld [vmem:[#allocation11 + $0x2ec] sm:$0xf]  ;;  %v2139_v61 = vld [vmem:[#allocation11 + $0x2c4] sm:$0xf]  ;;  %v1978_v23 = vld [vmem:[#allocation11 + $0x280] sm:$0xf] }
  0xd0   :  { %735 = vmatpush.bf16.msrb.mxu2 %v1664_v1  ;;  %748 = vmatpush.bf16.msrb.mxu3 %v1668_v2  ;;  %v1847_v1 = vor.u32 %v2160_v62, %v1844_v63  ;;  %v1818_v2 = vld [vmem:[#allocation11 + $0x340] sm:$0xf]  ;;  %v2012_v62 = vld [vmem:[#allocation11 + $0x2d0] sm:$0xf0]  ;;  %v2018_v63 = vld [vmem:[#allocation11 + $0x2c8] sm:$0xf] }
  0xd1   :  { %710 = vmatmul.bf16.vlgmr.msrb.gmra.mxu0 %v262_v3  ;;  %v835_v6 = vld [vmem:[#allocation8 + $0x8] sm:$0xff]  ;;  %v2133_v24 = vld [vmem:[#allocation11 + $0x28c] sm:$0xf0]  ;;  %v1988_v32 = vld [vmem:[#allocation11 + $0x298] sm:$0xf0]  ;;  %s1430_s28 = sshll.u32 %s2820_s7, 4  ;;  %s1431_s28 = int_to_ptr.hbm [resolvable:$true] %s1430_s28 }
  0xd2   :  { %723 = vmatmul.bf16.vlgmr.msrb.gmra.mxu1 %v262_v3  ;;  %1064 = vmatpush.bf16.msra.mxu0 %v1899_v7  ;;  %v1826_v7 = vld [vmem:[#allocation11 + $0x348] sm:$0xf]  ;;  %v2130_v46 = vld [vmem:[#allocation11 + $0x274] sm:$0xf0]  ;;  %s2628_s7 = smov [#allocation14]   ;;  %s1417_s5 = sshll.u32 %s2819_s6, 4  ;;  %s1418_s5 = int_to_ptr.hbm [resolvable:$true] %s1417_s5 }
  0xd3   :  { %736 = vmatmul.bf16.vlgmr.msrb.gmra.mxu2 %v262_v3  ;;  %749 = vmatmul.bf16.vlgmr.msrb.gmra.mxu3 %v262_v3  ;;  %v2157_v3 = vld [vmem:[#allocation11 + $0x34c] sm:$0xf0]  ;;  %v1827_v10 = vor.u32 %v2158_v8, %v1826_v7  ;;  %v871_v7 = vpack.c.bf16 %v835_v6, %v835_v6  ;;  %v1994_v8 = vld [vmem:[#allocation11 + $0x2a0] sm:$0xf]  ;;  %v1970_v45 = vld [vmem:[#allocation11 + $0x268] sm:$0xf] }
  0xd4   :  { %1077 = vmatpush.bf16.msra.mxu1 %v1903_v11  ;;  %1090 = vmatpush.bf16.msra.mxu2 %v1907_v12  ;;  %v1819_v5 = vor.u32 %v2157_v3, %v1818_v2  ;;  %v2156_v11 = vld [vmem:[#allocation11 + $0x34c] sm:$0xf]  ;;  %v1828_v12 = vld [vmem:[#allocation11 + $0x358] sm:$0xf0]  ;;  %v1930_v6 = vld [vmem:[#allocation11 + $0x220] sm:$0xf] }
  0xd5   :  { %1103 = vmatpush.bf16.msra.mxu3 %v1911_v16  ;;  %v1831_v14 = vor.u32 %v2156_v11, %v1828_v12  ;;  %v2140_v2 = vld [vmem:[#allocation11 + $0x2cc] sm:$0xf]  ;;  %v2020_v3 = vld [vmem:[#allocation11 + $0x2d8] sm:$0xf0]  ;;  %v1996_v12 = vld [vmem:[#allocation11 + $0x2b0] sm:$0xf0] }
  0xd6   :  { %1065 = vmatpush.bf16.msra.mxu0 %v1883_v20  ;;  %s1415_s4 = sshll.u32 %s2628_s7, 4  ;;  %s1416_s4 = int_to_ptr.vmem [resolvable:$true] %s1415_s4 }
  0xd8   :  { %1078 = vmatpush.bf16.msra.mxu1 %v1887_v21  ;;  %1091 = vmatpush.bf16.msra.mxu2 %v1891_v25  ;;  %v1803_v21 = vor.u32 %v2153_v18, %v1802_v17  ;;  %v1807_v25 = vor.u32 %v2151_v19, %v1804_v22  ;;  %v2136_v19 = vld [vmem:[#allocation11 + $0x2ac] sm:$0xf]  ;;  %v2788_v22 = vld [vmem:[#allocation12] sm:$0xf] }
  0xd9   :  { %1104 = vmatpush.bf16.msra.mxu3 %v1895_v27  ;;  %v2152_v27 = vld [vmem:[#allocation11 + $0x32c] sm:$0xf]  ;;  %v757_v34 = vperm.slane %v2788_v22, 1 }
  0xda   :  { %1066 = vmatpush.bf16.msra.mxu0 %v1867_v31  ;;  %v1815_v29 = vor.u32 %v2152_v27, %v1812_v28  ;;  %v2149_v31 = vld [vmem:[#allocation11 + $0x30c] sm:$0xf0]  ;;  %v1980_v27 = vld [vmem:[#allocation11 + $0x290] sm:$0xf0]  ;;  %v1986_v28 = vld [vmem:[#allocation11 + $0x288] sm:$0xf] }
  0xdb   :  { %v1787_v33 = vor.u32 %v2149_v31, %v1786_v30  ;;  %v2134_v30 = vld [vmem:[#allocation11 + $0x294] sm:$0xf0]  ;;  %v2132_v31 = vld [vmem:[#allocation11 + $0x28c] sm:$0xf] }
  0xdc   :  { %1079 = vmatpush.bf16.msra.mxu1 %v1871_v35  ;;  %1092 = vmatpush.bf16.msra.mxu2 %v1875_v36  ;;  %v1794_v35 = vld [vmem:[#allocation11 + $0x308] sm:$0xf]  ;;  %v2150_v36 = vld [vmem:[#allocation11 + $0x314] sm:$0xf0] }
  0xdd   :  { %1105 = vmatpush.bf16.msra.mxu3 %v1879_v39  ;;  %v1795_v38 = vor.u32 %v2150_v36, %v1794_v35  ;;  %v2148_v39 = vld [vmem:[#allocation11 + $0x30c] sm:$0xf]  ;;  %v1987_v35 = vor.u32 %v2134_v30, %v1986_v28  ;;  %v1991_v36 = vor.u32 %v2132_v31, %v1988_v32  ;;  %v1916_v30 = vld [vmem:[#allocation11 + $0x210] sm:$0xf0]  ;;  %v1922_v31 = vld [vmem:[#allocation11 + $0x208] sm:$0xf] }
  0xde   :  { %1067 = vmatpush.bf16.msra.mxu0 %v1851_v43  ;;  %v1799_v43 = vor.u32 %v2148_v39, %v1796_v40  ;;  %v2129_v39 = vld [vmem:[#allocation11 + $0x26c] sm:$0xf0]  ;;  %v2127_v40 = vld [vmem:[#allocation11 + $0x264] sm:$0xf]  ;;  %v2118_v32 = vld [vmem:[#allocation11 + $0x214] sm:$0xf0] }
  0xe0   :  { %1080 = vmatpush.bf16.msra.mxu1 %v1855_v47  ;;  %1093 = vmatpush.bf16.msra.mxu2 %v1859_v48  ;;  %v2027_v48 = vor.u32 %v2145_v44, %v2026_v41  ;;  %v1964_v44 = vld [vmem:[#allocation11 + $0x270] sm:$0xf0] }
  0xe1   :  { %1106 = vmatpush.bf16.msra.mxu3 %v1863_v51  ;;  %v2146_v51 = vld [vmem:[#allocation11 + $0x2f4] sm:$0xf0] }
  0xe2   :  { %1068 = vmatpush.bf16.msra.mxu0 %v1835_v56  ;;  %v2035_v54 = vor.u32 %v2146_v51, %v2034_v50  ;;  %v2036_v56 = vld [vmem:[#allocation11 + $0x2f8] sm:$0xf0]  ;;  %v2128_v50 = vld [vmem:[#allocation11 + $0x26c] sm:$0xf] }
  0xe3   :  { %v2039_v59 = vor.u32 %v2144_v53, %v2036_v56  ;;  %v1972_v51 = vld [vmem:[#allocation11 + $0x278] sm:$0xf0] }
  0xe4   :  { %1081 = vmatpush.bf16.msra.mxu1 %v1839_v60  ;;  %1094 = vmatpush.bf16.msra.mxu2 %v1843_v0  ;;  %v2011_v60 = vor.u32 %v2141_v58, %v2010_v57  ;;  %v2015_v0 = vor.u32 %v2139_v61, %v2012_v62  ;;  %v1975_v56 = vor.u32 %v2128_v50, %v1972_v51  ;;  %v1946_v57 = vld [vmem:[#allocation11 + $0x240] sm:$0xf]  ;;  %v2125_v58 = vld [vmem:[#allocation11 + $0x24c] sm:$0xf0]  ;;  %v1948_v62 = vld [vmem:[#allocation11 + $0x250] sm:$0xf0] }
  0xe5   :  { %1107 = vmatpush.bf16.msra.mxu3 %v1847_v1  ;;  %v2142_v1 = vld [vmem:[#allocation11 + $0x2d4] sm:$0xf0]  ;;  %v1947_v61 = vor.u32 %v2125_v58, %v1946_v57 }
  0xe6   :  { %1069 = vmatpush.bf16.msra.mxu0 %v1819_v5  ;;  %v2019_v4 = vor.u32 %v2142_v1, %v2018_v63  ;;  %v2023_v5 = vor.u32 %v2140_v2, %v2020_v3  ;;  %v2126_v1 = vld [vmem:[#allocation11 + $0x254] sm:$0xf0]  ;;  %v2124_v2 = vld [vmem:[#allocation11 + $0x24c] sm:$0xf] }
  0xe8   :  { %1082 = vmatpush.bf16.msra.mxu1 %v1823_v9  ;;  %1095 = vmatpush.bf16.msra.mxu2 %v1827_v10  ;;  %v2137_v9 = vld [vmem:[#allocation11 + $0x2ac] sm:$0xf0]  ;;  %v2135_v10 = vld [vmem:[#allocation11 + $0x2a4] sm:$0xf] }
  0xe9   :  { %1108 = vmatpush.bf16.msra.mxu3 %v1831_v14  ;;  %v1995_v11 = vor.u32 %v2137_v9, %v1994_v8  ;;  %v2002_v14 = vld [vmem:[#allocation11 + $0x2a8] sm:$0xf]  ;;  %v1999_v17 = vor.u32 %v2135_v10, %v1996_v12  ;;  %v1932_v12 = vld [vmem:[#allocation11 + $0x230] sm:$0xf0] }
  0xea   :  { %1070 = vmatpush.bf16.msra.mxu0 %v1803_v21 }
  0xec   :  { %1083 = vmatpush.bf16.msra.mxu1 %v1807_v25  ;;  %1096 = vmatpush.bf16.msra.mxu2 %v1811_v26  ;;  %v1979_v25 = vor.u32 %v2133_v24, %v1978_v23  ;;  %v2131_v26 = vld [vmem:[#allocation11 + $0x284] sm:$0xf]  ;;  %v1940_v23 = vld [vmem:[#allocation11 + $0x238] sm:$0xf0] }
  0xed   :  { %1109 = vmatpush.bf16.msra.mxu3 %v1815_v29  ;;  %v1983_v29 = vor.u32 %v2131_v26, %v1980_v27  ;;  %v2117_v26 = vld [vmem:[#allocation11 + $0x20c] sm:$0xf0]  ;;  %v2115_v27 = vld [vmem:[#allocation11 + $0x204] sm:$0xf] }
  0xee   :  { %1071 = vmatpush.bf16.msra.mxu0 %v1787_v33  ;;  %v756_v33 = vperm.slane %v2788_v22, 0 }
  0xf0   :  { %1084 = vmatpush.bf16.msra.mxu1 %v1791_v37  ;;  %1097 = vmatpush.bf16.msra.mxu2 %v1795_v38  ;;  %v1962_v38 = vld [vmem:[#allocation11 + $0x260] sm:$0xf] }
  0xf1   :  { %1110 = vmatpush.bf16.msra.mxu3 %v1799_v43  ;;  %1072 = vmatmul.bf16.vlgmr.msra.gmra.mxu0 %v871_v7  ;;  %v1963_v43 = vor.u32 %v2129_v39, %v1962_v38 }
  0xf2   :  { %1276 = vmatpush.bf16.msrb.mxu0 %v2027_v48  ;;  %v1967_v48 = vor.u32 %v2127_v40, %v1964_v44  ;;  %v1923_v40 = vor.u32 %v2118_v32, %v1922_v31 }
  0xf3   :  { %1085 = vmatmul.bf16.vlgmr.msra.gmra.mxu1 %v871_v7  ;;  %1098 = vmatmul.bf16.vlgmr.msra.gmra.mxu2 %v871_v7 }
  0xf4   :  { %1289 = vmatpush.bf16.msrb.mxu1 %v2031_v49  ;;  %1302 = vmatpush.bf16.msrb.mxu2 %v2035_v54  ;;  %v1971_v49 = vor.u32 %v2130_v46, %v1970_v45  ;;  %v759_v54 = vperm.slane %v2788_v22, 3  ;;  %v758_v46 = vperm.slane %v2788_v22, 2 }
  0xf5   :  { %1315 = vmatpush.bf16.msrb.mxu3 %v2039_v59  ;;  %v2123_v59 = vld [vmem:[#allocation11 + $0x244] sm:$0xf] }
  0xf6   :  { %1277 = vmatpush.bf16.msrb.mxu0 %v2011_v60  ;;  %1111 = vmatmul.bf16.vlgmr.msra.gmra.mxu3 %v871_v7  ;;  %v2121_v7 = vld [vmem:[#allocation11 + $0x22c] sm:$0xf0] }
  0xf8   :  { %1290 = vmatpush.bf16.msrb.mxu1 %v2015_v0  ;;  %1303 = vmatpush.bf16.msrb.mxu2 %v2019_v4  ;;  %v1951_v0 = vor.u32 %v2123_v59, %v1948_v62 }
  0xf9   :  { %1316 = vmatpush.bf16.msrb.mxu3 %v2023_v5  ;;  %v1956_v5 = vld [vmem:[#allocation11 + $0x258] sm:$0xf0] }
  0xfa   :  { %1278 = vmatpush.bf16.msrb.mxu0 %v1995_v11  ;;  %v1959_v10 = vor.u32 %v2124_v2, %v1956_v5  ;;  %v2119_v11 = vld [vmem:[#allocation11 + $0x224] sm:$0xf] }
  0xfc   :  { %1291 = vmatpush.bf16.msrb.mxu1 %v1999_v17 }
  0xfe   :  { %1279 = vmatpush.bf16.msrb.mxu0 %v1979_v25  ;;  %v1914_v25 = vld [vmem:[#allocation11 + $0x200] sm:$0xf] }
 0x100   :  { %1292 = vmatpush.bf16.msrb.mxu1 %v1983_v29 }
 0x102   :  { %1280 = vmatpush.bf16.msrb.mxu0 %v1963_v43 }
 0x104   :  { %1293 = vmatpush.bf16.msrb.mxu1 %v1967_v48 }
 0x106   :  { %1281 = vmatpush.bf16.msrb.mxu0 %v1947_v61 }
 0x108   :  { %1294 = vmatpush.bf16.msrb.mxu1 %v1951_v0 }
 0x12e   :  { %v2780_v52 = vpop.f32.mrf.mxu0 }
 0x12f   :  { %v2782_v55 = vpop.f32.mrf.mxu1 }
 0x136   :  { %v2784_v13 = vpop.f32.mrf.mxu3  ;;  %v501_v15 = vpop.f32.mrf.mxu0 }
 0x137   :  { %v514_v20 = vpop.f32.mrf.mxu1  ;;  %v2138_v15 = vld [vmem:[#allocation11 + $0x2b4] sm:$0xf0] }
 0x138   :  { %v2786_v16 = vpop.f32.mrf.mxu2  ;;  %v2003_v18 = vor.u32 %v2138_v15, %v2002_v14  ;;  %v2004_v20 = vld [vmem:[#allocation11 + $0x2b8] sm:$0xf0]  ;;  %v1938_v14 = vld [vmem:[#allocation11 + $0x228] sm:$0xf] }
 0x139   :  { %v2007_v21 = vor.u32 %v2136_v19, %v2004_v20  ;;  %v1935_v19 = vor.u32 %v2119_v11, %v1932_v12  ;;  %v2122_v20 = vld [vmem:[#allocation11 + $0x234] sm:$0xf0] }
 0x13a   :  { %1304 = vmatpush.bf16.msrb.mxu2 %v2003_v18  ;;  %v1931_v18 = vor.u32 %v2121_v7, %v1930_v6  ;;  %v1939_v24 = vor.u32 %v2122_v20, %v1938_v14 }
 0x13b   :  { %1317 = vmatpush.bf16.msrb.mxu3 %v2007_v21  ;;  %v2120_v21 = vld [vmem:[#allocation11 + $0x22c] sm:$0xf]  ;;  %1295 = vmatpush.bf16.msrb.mxu1 %v1935_v19 }
 0x13c   :  { %v1943_v29 = vor.u32 %v2120_v21, %v1940_v23  ;;  %1282 = vmatpush.bf16.msrb.mxu0 %v1931_v18 }
 0x13e   :  { %v540_v42 = vpop.f32.mrf.mxu3  ;;  %1305 = vmatpush.bf16.msrb.mxu2 %v1987_v35 }
 0x13f   :  { %1318 = vmatpush.bf16.msrb.mxu3 %v1991_v36  ;;  %v1915_v36 = vor.u32 %v2117_v26, %v1914_v25 }
 0x140   :  { %v527_v47 = vpop.f32.mrf.mxu2 }
 0x141   :  { %1283 = vmatpush.bf16.msrb.mxu0 %v1915_v36 }
 0x142   :  { %1306 = vmatpush.bf16.msrb.mxu2 %v1971_v49 }
 0x143   :  { %1319 = vmatpush.bf16.msrb.mxu3 %v1975_v56 }
 0x147   :  { %1320 = vmatpush.bf16.msrb.mxu3 %v1959_v10 }
 0x14b   :  { %1321 = vmatpush.bf16.msrb.mxu3 %v1943_v29 }
 0x14e   :  { %v711_v37 = vpop.f32.mrf.mxu0 }
 0x14f   :  { %v712_v41 = vadd.f32 %v711_v37, %v2780_v52  ;;  %v724_v42 = vpop.f32.mrf.mxu1  ;;  %v1919_v37 = vor.u32 %v2115_v27, %v1916_v30 }
 0x150   :  { %v725_v47 = vadd.f32 %v724_v42, %v2782_v55  ;;  %v1954_v55 = vld [vmem:[#allocation11 + $0x248] sm:$0xf] }
 0x151   :  { %v764_v53 = vadd.f32 %v756_v33, %v712_v41  ;;  %v1955_v4 = vor.u32 %v2126_v1, %v1954_v55  ;;  %v1924_v33 = vld [vmem:[#allocation11 + $0x218] sm:$0xf0]  ;;  %1296 = vmatpush.bf16.msrb.mxu1 %v1919_v37  ;;  %v264_v1 = vld [vmem:[#allocation9] sm:$0xff] }
 0x152   :  { %v765_v52 = vadd.f32 %v757_v34, %v725_v47 }
 0x153   :  { %v1781_v60 = vmul.f32 -1.442695, %v764_v53  ;;  %1307 = vmatpush.bf16.msrb.mxu2 %v1955_v4 }
 0x154   :  { %v1782_v63 = vmul.f32 -1.442695, %v765_v52 }
 0x155   :  { %2200 = vpow2.f32 %v1781_v60 }
 0x156   :  { %v737_v3 = vpop.f32.mrf.mxu2  ;;  %2202 = vpow2.f32 %v1782_v63  ;;  %v750_v8 = vpop.f32.mrf.mxu3 }
 0x157   :  { %v713_v9 = vpop.f32.mrf.mxu0  ;;  %v751_v15 = vadd.f32 %v750_v8, %v2784_v13  ;;  %v726_v17 = vpop.f32.mrf.mxu1  ;;  %v2116_v13 = vld [vmem:[#allocation11 + $0x20c] sm:$0xf]  ;;  %1308 = vmatpush.bf16.msrb.mxu2 %v1939_v24  ;;  %v738_v45 = vadd.f32 %v737_v3, %v2786_v16 }
 0x158   :  { %v1927_v43 = vor.u32 %v2116_v13, %v1924_v33  ;;  %v1329_v13 = vld [vmem:[#allocation12 + $0x4] sm:$0xf] }
 0x159   :  { %v767_v28 = vadd.f32 %v759_v54, %v751_v15  ;;  %v766_v49 = vadd.f32 %v758_v46, %v738_v45  ;;  %v1331_v33 = vperm.slane %v1329_v13, 0 }
 0x15a   :  { %1322 = vmatpush.bf16.msrb.mxu3 %v1927_v43  ;;  %v1334_v43 = vperm.slane %v1329_v13, 3 }
 0x15b   :  { %v2201_v34 = vpop.eup %2200  ;;  %v1783_v35 = vmul.f32 -1.442695, %v767_v28  ;;  %1309 = vmatpush.bf16.msrb.mxu2 %v1923_v40 }
 0x15c   :  { %v2203_v38 = vpop.eup %2202  ;;  %v771_v39 = vadd.f32 1.0, %v2201_v34  ;;  %v1332_v34 = vperm.slane %v1329_v13, 1 }
 0x15d   :  { %v790_v41 = vadd.f32 1.0, %v2203_v38  ;;  %2204 = vpow2.f32 %v1783_v35 }
 0x15e   :  { %v739_v42 = vpop.f32.mrf.mxu2  ;;  %2206 = vrcp.f32 %v771_v39  ;;  %v752_v44 = vpop.f32.mrf.mxu3  ;;  %v783_v57 = vand.u32 2147483648, %v771_v39  ;;  %v781_v16 = vand.u32 2147483647, %v771_v39  ;;  %vm777_vm2 = vweird.f32 %v771_v39 }
 0x15f   :  { %2208 = vrcp.f32 %v790_v41  ;;  %v802_v58 = vand.u32 2147483648, %v790_v41  ;;  %v800_v22 = vand.u32 2147483647, %v790_v41  ;;  %vm796_vm3 = vweird.f32 %v790_v41 }
 0x160   :  { %v784_v55 = vor.u32 1.1754944e-38, %v783_v57  ;;  %vm782_vm6 = vcmp.eq.f32.partialorder %v781_v16, 8.507059e+37 }
 0x161   :  { %v803_v0 = vor.u32 1.1754944e-38, %v802_v58  ;;  %vm801_vm7 = vcmp.eq.f32.partialorder %v800_v22, 8.507059e+37 }
 0x163   :  { %v2205_v47 = vpop.eup %2204 }
 0x164   :  { %v2207_v48 = vpop.eup %2206  ;;  %v810_v50 = vadd.f32 1.0, %v2205_v47 }
 0x165   :  { %v2209_v51 = vpop.eup %2208  ;;  %v773_v53 = vmul.f32 %v2207_v48, %v771_v39  ;;  %vm778_vm0 = vweird.f32 %v2207_v48 }
 0x166   :  { %v792_v54 = vmul.f32 %v2209_v51, %v790_v41  ;;  %2210 = vrcp.f32 %v810_v50  ;;  %vm797_vm1 = vweird.f32 %v2209_v51  ;;  %vm779_vm4 = vmor %vm777_vm2, %vm778_vm0  ;;  %v822_v15 = vand.u32 2147483648, %v810_v50 }
 0x167   :  { %v774_v56 = vsub.f32 1.0, %v773_v53  ;;  %2212 = vtanh.f32 %v766_v49  ;;  %vm798_vm5 = vmor %vm796_vm3, %vm797_vm1  ;;  %vm816_vm9 = vweird.f32 %v810_v50  ;;  %v820_v17 = vand.u32 2147483647, %v810_v50 }
 0x168   :  { %v793_v52 = vsub.f32 1.0, %v792_v54  ;;  %v823_v19 = vor.u32 1.1754944e-38, %v822_v15  ;;  %v837_v15 = vld [vmem:[#allocation9 + $0x8] sm:$0xff] }
 0x169   :  { %v775_v59 = vmul.f32 %v2207_v48, %v774_v56  ;;  %vm821_vm11 = vcmp.eq.f32.partialorder %v820_v17, 8.507059e+37 }
 0x16a   :  { %v794_v60 = vmul.f32 %v2209_v51, %v793_v52 }
 0x16b   :  { %v776_v61 = vadd.f32 %v2207_v48, %v775_v59  ;;  %v1333_v59 = vperm.slane %v1329_v13, 2 }
 0x16c   :  { %v2211_v62 = vpop.eup %2210  ;;  %v795_v63 = vadd.f32 %v2209_v51, %v794_v60 }
 0x16d   :  { %v780_v2 = vsel %vm779_vm4, %v2207_v48, %v776_v61  ;;  %v812_v3 = vmul.f32 %v2211_v62, %v810_v50  ;;  %v2213_v4 = vpop.eup %2212  ;;  %vm817_vm8 = vweird.f32 %v2211_v62 }
 0x16e   :  { %v785_v5 = vsel %vm782_vm6, %v784_v55, %v780_v2  ;;  %v799_v6 = vsel %vm798_vm5, %v2209_v51, %v795_v63  ;;  %vm818_vm10 = vmor %vm816_vm9, %vm817_vm8  ;;  %v1073_v25 = vpop.f32.mrf.mxu0 }
 0x16f   :  { %v804_v7 = vsel %vm801_vm7, %v803_v0, %v799_v6  ;;  %v827_v8 = vmul.f32 %v2213_v4, %v785_v5  ;;  %v813_v9 = vsub.f32 1.0, %v812_v3 }
 0x170   :  { %v826_v10 = vmul.f32 %v804_v7, %v264_v1  ;;  %v1086_v26 = vpop.f32.mrf.mxu1 }
 0x171   :  { %v814_v11 = vmul.f32 %v2211_v62, %v813_v9 }
 0x172   :  { %v828_v12 = vadd.f32 %v827_v8, %v826_v10 }
 0x173   :  { %v815_v14 = vadd.f32 %v2211_v62, %v814_v11 }
 0x174   :  { %2214 = vtanh.f32 %v828_v12  ;;  %832 = vst [vmem:[#allocation15] sm:$0xff] %v828_v12 }
 0x175   :  { %v819_v18 = vsel %vm818_vm10, %v2211_v62, %v815_v14 }
 0x176   :  { %v824_v21 = vsel %vm821_vm11, %v823_v19, %v819_v18  ;;  %v1075_v27 = vpop.f32.mrf.mxu0  ;;  %v1099_v30 = vpop.f32.mrf.mxu2 }
 0x178   :  { %v1088_v29 = vpop.f32.mrf.mxu1 }
 0x179   :  { %v1112_v28 = vpop.f32.mrf.mxu3 }
 0x17a   :  { %v2215_v20 = vpop.eup %2214 }
 0x17b   :  { %v830_v23 = vmul.f32 %v2215_v20, %v824_v21 }
 0x17d   :  { %v833_v24 = vpack.c.bf16 %v830_v23, %v830_v23  ;;  %831 = vst [vmem:[#allocation14] sm:$0xff] %v830_v23 }
 0x17e   :  { %v1101_v32 = vpop.f32.mrf.mxu2 }
 0x17f   :  { %1284 = vmatmul.bf16.vlgmr.msrb.gmra.mxu0 %v833_v24  ;;  %1297 = vmatmul.bf16.vlgmr.msrb.gmra.mxu1 %v833_v24 }
 0x180   :  { %1310 = vmatmul.bf16.vlgmr.msrb.gmra.mxu2 %v833_v24  ;;  %1323 = vmatmul.bf16.vlgmr.msrb.gmra.mxu3 %v833_v24 }
 0x181   :  { %v1114_v31 = vpop.f32.mrf.mxu3 }
 0x1fc   :  { %v1285_v35 = vpop.f32.mrf.mxu0  ;;  %v1298_v36 = vpop.f32.mrf.mxu1 }
 0x1fd   :  { %v1286_v37 = vadd.f32 %v1285_v35, %v1073_v25  ;;  %v1299_v38 = vadd.f32 %v1298_v36, %v1086_v26 }
 0x1ff   :  { %v1339_v39 = vadd.f32 %v1331_v33, %v1286_v37  ;;  %v1340_v40 = vadd.f32 %v1332_v34, %v1299_v38 }
 0x201   :  { %v2040_v41 = vmul.f32 -1.442695, %v1339_v39  ;;  %v2041_v42 = vmul.f32 -1.442695, %v1340_v40 }
 0x203   :  { %2216 = vpow2.f32 %v2040_v41  ;;  %v1311_v44 = vpop.f32.mrf.mxu2  ;;  %v1324_v45 = vpop.f32.mrf.mxu3 }
 0x204   :  { %2218 = vpow2.f32 %v2041_v42  ;;  %v1325_v46 = vadd.f32 %v1324_v45, %v1112_v28  ;;  %v1287_v47 = vpop.f32.mrf.mxu0  ;;  %v1300_v48 = vpop.f32.mrf.mxu1  ;;  %v1312_v58 = vadd.f32 %v1311_v44, %v1099_v30 }
 0x206   :  { %v1342_v49 = vadd.f32 %v1334_v43, %v1325_v46  ;;  %v1341_v61 = vadd.f32 %v1333_v59, %v1312_v58 }
 0x208   :  { %v2042_v50 = vmul.f32 -1.442695, %v1342_v49 }
 0x209   :  { %v2217_v51 = vpop.eup %2216 }
 0x20a   :  { %v2219_v53 = vpop.eup %2218  ;;  %v1346_v54 = vadd.f32 1.0, %v2217_v51  ;;  %2220 = vpow2.f32 %v2042_v50 }
 0x20b   :  { %v1365_v56 = vadd.f32 1.0, %v2219_v53  ;;  %v1313_v52 = vpop.f32.mrf.mxu2  ;;  %v1326_v57 = vpop.f32.mrf.mxu3 }
 0x20c   :  { %2222 = vrcp.f32 %v1346_v54  ;;  %v1358_v2 = vand.u32 2147483648, %v1346_v54  ;;  %v1356_v5 = vand.u32 2147483647, %v1346_v54  ;;  %vm1352_vm14 = vweird.f32 %v1346_v54 }
 0x20d   :  { %2224 = vrcp.f32 %v1365_v56  ;;  %v1377_v3 = vand.u32 2147483648, %v1365_v56  ;;  %v1375_v7 = vand.u32 2147483647, %v1365_v56  ;;  %vm1371_vm15 = vweird.f32 %v1365_v56 }
 0x20e   :  { %v1359_v10 = vor.u32 1.1754944e-38, %v1358_v2  ;;  %vm1357_vm2 = vcmp.eq.f32.partialorder %v1356_v5, 8.507059e+37 }
 0x20f   :  { %v1378_v14 = vor.u32 1.1754944e-38, %v1377_v3  ;;  %vm1376_vm3 = vcmp.eq.f32.partialorder %v1375_v7, 8.507059e+37 }
 0x210   :  { %v2221_v16 = vpop.eup %2220 }
 0x211   :  { %v1385_v60 = vadd.f32 1.0, %v2221_v16 }
 0x212   :  { %v2223_v22 = vpop.eup %2222 }
 0x213   :  { %v2225_v62 = vpop.eup %2224  ;;  %v1348_v55 = vmul.f32 %v2223_v22, %v1346_v54  ;;  %2226 = vrcp.f32 %v1385_v60  ;;  %vm1353_vm12 = vweird.f32 %v2223_v22  ;;  %v1397_v29 = vand.u32 2147483648, %v1385_v60 }
 0x214   :  { %v1367_v63 = vmul.f32 %v2225_v62, %v1365_v56  ;;  %2228 = vtanh.f32 %v1341_v61  ;;  %vm1372_vm13 = vweird.f32 %v2225_v62  ;;  %vm1354_vm0 = vmor %vm1352_vm14, %vm1353_vm12  ;;  %vm1391_vm5 = vweird.f32 %v1385_v60 }
 0x215   :  { %v1349_v0 = vsub.f32 1.0, %v1348_v55  ;;  %vm1373_vm1 = vmor %vm1371_vm15, %vm1372_vm13  ;;  %v1395_v30 = vand.u32 2147483647, %v1385_v60  ;;  %v1398_v32 = vor.u32 1.1754944e-38, %v1397_v29 }
 0x216   :  { %v1368_v1 = vsub.f32 1.0, %v1367_v63 }
 0x217   :  { %v1350_v4 = vmul.f32 %v2223_v22, %v1349_v0  ;;  %vm1396_vm7 = vcmp.eq.f32.partialorder %v1395_v30, 8.507059e+37 }
 0x218   :  { %v1369_v6 = vmul.f32 %v2225_v62, %v1368_v1 }
 0x219   :  { %v2227_v8 = vpop.eup %2226  ;;  %v1351_v9 = vadd.f32 %v2223_v22, %v1350_v4 }
 0x21a   :  { %v1370_v11 = vadd.f32 %v2225_v62, %v1369_v6  ;;  %v1387_v12 = vmul.f32 %v2227_v8, %v1385_v60  ;;  %v2229_v18 = vpop.eup %2228  ;;  %vm1392_vm4 = vweird.f32 %v2227_v8 }
 0x21b   :  { %v1355_v17 = vsel %vm1354_vm0, %v2223_v22, %v1351_v9  ;;  %vm1393_vm6 = vmor %vm1391_vm5, %vm1392_vm4 }
 0x21c   :  { %v1360_v19 = vsel %vm1357_vm2, %v1359_v10, %v1355_v17  ;;  %v1374_v20 = vsel %vm1373_vm1, %v2225_v62, %v1370_v11  ;;  %v1388_v21 = vsub.f32 1.0, %v1387_v12 }
 0x21d   :  { %v1379_v23 = vsel %vm1376_vm3, %v1378_v14, %v1374_v20  ;;  %v1402_v24 = vmul.f32 %v2229_v18, %v1360_v19 }
 0x21e   :  { %v1401_v25 = vmul.f32 %v1379_v23, %v837_v15  ;;  %v1389_v26 = vmul.f32 %v2227_v8, %v1388_v21 }
 0x220   :  { %v1403_v27 = vadd.f32 %v1402_v24, %v1401_v25  ;;  %v1390_v28 = vadd.f32 %v2227_v8, %v1389_v26 }
 0x222   :  { %2230 = vtanh.f32 %v1403_v27  ;;  %1409 = vst [vmem:[#allocation15 + $0x8] sm:$0xff] %v1403_v27  ;;  %v1394_v31 = vsel %vm1393_vm6, %v2227_v8, %v1390_v28 }
 0x223   :  { %1436 = dma.vmem_to_hbm [thread:$0]  %s1429_s29, 256, %s1431_s28, [#allocation16], %s2609_s13, %s2609_s13, %s2610_s14   ;;  %v1399_v33 = vsel %vm1396_vm7, %v1398_v32, %v1394_v31 }
 0x228   :  { %v2231_v13 = vpop.eup %2230 }
 0x229   :  { %v1405_v34 = vmul.f32 %v2231_v13, %v1399_v33 }
 0x22b   :  { %1407 = vst [vmem:[#allocation14 + $0x8] sm:$0xff] %v1405_v34 }
 0x22c   :  { %1410 = vst [vmem:[%s2821_s8] sm:$0xff] %v1405_v34 }
 0x22d   :  { %1423 = dma.vmem_to_hbm [thread:$0]  %s1416_s4, 256, %s1418_s5, [#allocation6], %s2609_s13, %s2609_s13, %s2610_s14  }
 0x22e   :  { %2604 = dma.done.wait [#allocation6], 256  }
 0x22f   :  { %2605 = vsyncadd [#allocation6], 4294967040 }
 0x230   :  { %2606 = dma.done.wait [#allocation16], 256  }
 0x231   :  { %2607 = vsyncadd [#allocation16], 4294967040 }
 0x232   :  { %1449 = vsyncpa [#allocation5], 1 }
 0x233   :  { %1450 = vsyncpa [#allocation10], 1 }
 0x234   :  { %1451 = vsyncpa [#allocation13], 1 }
 0x235   :  { %1452 = vsyncpa [#allocation6], 1 }
 0x236   :  { %1453 = vsyncpa [#allocation16], 1 }
 0x237   :  { %1454 = vsyncpa [#allocation7], 1 }
 0x238   :  { %1455 = vsyncmov [#allocation3] }
 0x23b   :  { %s1456_s6 = vpop.sfrf %1455 }
 0x23c   :  { %p2043_p12 = scmp.ne.s32.totalorder %s1456_s6, 0 }
 0x23e   :  { %1460 = shalt.err (%p2043_p12)  }
 0x23f   :  { %1462 = vsyncmov [#allocation3 + $0x1] }
 0x242   :  { %s1463_s8 = vpop.sfrf %1462 }
 0x243   :  { %p2044_p13 = scmp.ne.s32.totalorder %s1463_s8, 0 }
 0x245   :  { %1467 = shalt.err (%p2044_p13)  }
 0x246   :  { %1469 = vsyncmov [#allocation3 + $0x2] }
 0x249   :  { %s1470_s13 = vpop.sfrf %1469 }
 0x24a   :  { %p2045_p0 = scmp.ne.s32.totalorder %s1470_s13, 0 }
 0x24c   :  { %1474 = shalt.err (%p2045_p0)  }
 0x24d   :  { %1476 = vsyncmov [#allocation3 + $0x3] }
 0x250   :  { %s1477_s14 = vpop.sfrf %1476 }
 0x251   :  { %p2046_p1 = scmp.ne.s32.totalorder %s1477_s14, 0 }
 0x253   :  { %1481 = shalt.err (%p2046_p1)  }
 0x254   :  { %1483 = vsyncmov [#allocation3 + $0x4] }
 0x257   :  { %s1484_s10 = vpop.sfrf %1483 }
 0x258   :  { %p2047_p2 = scmp.ne.s32.totalorder %s1484_s10, 0 }
 0x25a   :  { %1488 = shalt.err (%p2047_p2)  }
 0x25b   :  { %1490 = vsyncmov [#allocation3 + $0x5] }
 0x25e   :  { %s1491_s17 = vpop.sfrf %1490 }
 0x25f   :  { %p2048_p3 = scmp.ne.s32.totalorder %s1491_s17, 0 }
 0x261   :  { %1495 = shalt.err (%p2048_p3)  }
 0x262   :  { %1497 = vsyncmov [#allocation3 + $0x6] }
 0x265   :  { %s1498_s20 = vpop.sfrf %1497 }
 0x266   :  { %p2049_p4 = scmp.ne.s32.totalorder %s1498_s20, 0 }
 0x268   :  { %1502 = shalt.err (%p2049_p4)  }
 0x269   :  { %1504 = vsyncmov [#allocation3 + $0x7] }
 0x26c   :  { %s1505_s11 = vpop.sfrf %1504 }
 0x26d   :  { %p2050_p5 = scmp.ne.s32.totalorder %s1505_s11, 0 }
 0x26f   :  { %1509 = shalt.err (%p2050_p5)  }

</bundles_post_ra>
